<compile_context>
chip_gen: v6e
topology: v6e:2x2x1
jax: 0.10.0
libtpu: 0.0.40
codegen_flags: <defaults>
</compile_context>

<pallas_src>
import numpy as np
import jax
import jax.numpy as jnp
from jax.experimental import pallas as pl
from jax.experimental.pallas import tpu as pltpu

F32 = jnp.float32
BF16 = jnp.bfloat16
_VMEM = pl.BlockSpec(memory_space=pltpu.MemorySpace.VMEM)


def _detect_vmem_limit_bytes():
    """Generation-aware VMEM budget (v7x: 64 MiB physical, v5e/v6e: 128 MiB)."""
    cap = 128 * 1024 * 1024
    try:
        fn = getattr(pltpu, "get_tpu_info", None)
        if fn is not None:
            cap = int(getattr(fn(), "vmem_capacity_bytes", cap))
    except Exception:
        pass
    return int(max(32 * 1024 * 1024, min(cap * 5 // 8, 96 * 1024 * 1024)))


_VMEM_LIMIT = _detect_vmem_limit_bytes()
_CPARAMS = pltpu.CompilerParams(vmem_limit_bytes=_VMEM_LIMIT)


# --------------------------------------------------------------------------- #
# Pallas kernels
# --------------------------------------------------------------------------- #
def _fusion_kernel(x_ref, w1_ref, b1_ref, w2_ref, b2_ref, o_ref):
    # Linear -> ReLU -> (dropout=identity) -> Linear, bf16 MXU / f32 accumulate.
    h = jnp.dot(x_ref[...].astype(BF16), w1_ref[...],
                preferred_element_type=F32) + b1_ref[...]
    h = jnp.maximum(h, 0.0)
    o_ref[...] = jnp.dot(h.astype(BF16), w2_ref[...],
                         preferred_element_type=F32) + b2_ref[...]


def fusion_mlp(x, w1, b1, w2, b2):
    return pl.pallas_call(
        _fusion_kernel,
        out_shape=jax.ShapeDtypeStruct((x.shape[0], w2.shape[1]), F32),
        in_specs=[_VMEM] * 5,
        out_specs=_VMEM,
        compiler_params=_CPARAMS,
    )(x, w1, b1, w2, b2)


def _gcn_pool_kernel(x_ref, a_ref, w_ref, b_ref, m_ref, p_ref, xc_ref, pool_ref):
    # Cluster-wise GCNConv  +  fused per-cluster mean pooling (all-bf16 MXU).
    x = x_ref[...]
    xw = jnp.dot(x.astype(BF16), w_ref[...], preferred_element_type=F32)
    upd = jnp.dot(a_ref[...], xw.astype(BF16), preferred_element_type=F32) + b_ref[...]
    xc = jnp.where(m_ref[...] > 0.0, upd, x)        # skipped clusters keep X
    xc_ref[...] = xc
    pool_ref[...] = jnp.dot(p_ref[...], xc.astype(BF16), preferred_element_type=F32)


def gcn_pool(x, a_norm, w, b, mask, pool_p):
    n, d = x.shape
    c = pool_p.shape[0]
    return pl.pallas_call(
        _gcn_pool_kernel,
        out_shape=(jax.ShapeDtypeStruct((n, d), F32),
                   jax.ShapeDtypeStruct((c, d), F32)),
        in_specs=[_VMEM] * 6,
        out_specs=(_VMEM, _VMEM),
        compiler_params=_CPARAMS,
    )(x, a_norm, w, b, mask, pool_p)


def _gat_core(x, wfused, edge_bias, ST, Tt, expand, reduce_m, bias):
    """Fused multi-head GATConv (concat=False) on a dense edge representation.

    x        : (N, D)   f32 node features
    wfused   : (D, H*D + 2H) bf16  = [W_all | W_as | W_ad]
    edge_bias: (E, H)   f32  precomputed att_edge . (W_edge edge_attr)
    ST       : (E, 2N)  bf16 [src-one-hot | dst-one-hot]
    Tt       : (N, E)   bf16 dst-one-hot transpose (scatter to destinations)
    expand   : (H, H*D) bf16 per-head scalar -> lane broadcast
    reduce_m : (H*D, D) bf16 mean over heads
    bias     : (1, D)   f32
    """
    H, HD = expand.shape
    N = x.shape[0]
    x_bf = x.astype(BF16)

    # One fused projection: [x@W_all | x@(W a_src) | x@(W a_dst)]  -> (N, HD+2H)
    proj = jnp.dot(x_bf, wfused, preferred_element_type=F32)
    top = proj[:, :HD + H]                                   # [xw_all | a_src]
    a_dst = proj[:, HD + H:]                                 # (N, H)
    bottom = jnp.concatenate([jnp.zeros((N, HD), F32), a_dst], axis=1)
    G = jnp.concatenate([top, bottom], axis=0).astype(BF16)  # (2N, HD+H)

    # One fused edge gather: h_src and node part of the logit in one pass.
    gathered = jnp.dot(ST, G, preferred_element_type=F32)    # (E, HD+H)
    h_src = gathered[:, :HD]                                 # (E, HD)
    logit = gathered[:, HD:] + edge_bias                     # (E, H)
    logit = jnp.where(logit > 0.0, logit, 0.2 * logit)       # LeakyReLU(0.2)
    # Shifting every head by its single global max is exact for a grouped
    # (per-destination) softmax: the factor cancels between numer and denom.
    p = jnp.exp(logit - jnp.max(logit, axis=0, keepdims=True))          # (E, H)

    # Broadcast per-head weights across that head's lanes (tiny bf16 matmul).
    p_full = jnp.dot(p.astype(BF16), expand, preferred_element_type=F32)  # (E, HD)

    # One fused destination scatter: numerator and denominator together.
    scat_in = jnp.concatenate([p_full * h_src, p], axis=1).astype(BF16)   # (E, HD+H)
    scat = jnp.dot(Tt, scat_in, preferred_element_type=F32)               # (N, HD+H)
    numer = scat[:, :HD]
    denom = scat[:, HD:]                                                   # (N, H)

    # Reciprocal on the narrow (N, H) denominator, then expand to lanes.
    inv = pl.reciprocal(denom + 1e-20, approx=True)                        # (N, H)
    inv_full = jnp.dot(inv.astype(BF16), expand, preferred_element_type=F32)
    heads = numer * inv_full                                               # (N, HD)

    # Mean over heads (concat=False) + bias.
    return jnp.dot(heads.astype(BF16), reduce_m, preferred_element_type=F32) + bias


def _cluster_gat_kernel(cl_ref, wf_ref, eb_ref, st_ref, tt_ref, exp_ref, red_ref,
                        bias_ref, xc_ref, assign_ref, o_ref):
    gat_out = _gat_core(cl_ref[...], wf_ref[...], eb_ref[...], st_ref[...],
                        tt_ref[...], exp_ref[...], red_ref[...], bias_ref[...])
    # Fused epilogue: gather cluster_info per node and add the Xc residual.
    o_ref[...] = xc_ref[...] + jnp.dot(assign_ref[...], gat_out.astype(BF16),
                                       preferred_element_type=F32)


def cluster_gat_combine(cl, wfused, eb, ST, Tt, expand, reduce_m, bias, xc, assign):
    return pl.pallas_call(
        _cluster_gat_kernel,
        out_shape=jax.ShapeDtypeStruct(xc.shape, F32),
        in_specs=[_VMEM] * 10,
        out_specs=_VMEM,
        compiler_params=_CPARAMS,
    )(cl, wfused, eb, ST, Tt, expand, reduce_m, bias, xc, assign)


def _gat_stack_kernel(x_ref, wf_ref, eb_ref, st_ref, tt_ref, exp_ref, red_ref,
                      bias_ref, gnw_ref, gnb_ref, gnms_ref, o_ref, xs_ref):
    """One grid step == one GAT layer + GraphNorm + residual + ELU.

    S|T / Tt / expand / reduce are resident in VMEM across the whole stack
    (constant index_maps); the node state is carried in the xs VMEM scratch.
    """
    layer = pl.program_id(0)

    @pl.when(layer == 0)
    def _():
        xs_ref[...] = x_ref[...]

    x_in = xs_ref[...]
    gat_out = _gat_core(x_in, wf_ref[0], eb_ref[0], st_ref[...], tt_ref[...],
                        exp_ref[...], red_ref[...], bias_ref[0])
    # GraphNorm (single graph) + residual + ELU epilogue.
    mean = jnp.mean(gat_out, axis=0, keepdims=True)
    ctr = gat_out - mean * gnms_ref[0]
    var = jnp.mean(ctr * ctr, axis=0, keepdims=True)
    y = gnw_ref[0] * ctr * jax.lax.rsqrt(var + 1e-5) + gnb_ref[0]
    z = y + x_in
    out = jnp.where(z > 0.0, z, jnp.exp(z) - 1.0)
    xs_ref[...] = out
    o_ref[...] = out


def gat_stack(x, wf_stack, eb_stack, ST, Tt, expand, reduce_m, bias_stack,
              gnw_stack, gnb_stack, gnms_stack):
    L = wf_stack.shape[0]
    N, D = x.shape

    def full2(a):
        return pl.BlockSpec(a.shape, lambda l: (0, 0))

    def per_layer(a):
        return pl.BlockSpec((1,) + tuple(a.shape[1:]), lambda l: (l, 0, 0))

    return pl.pallas_call(
        _gat_stack_kernel,
        out_shape=jax.ShapeDtypeStruct((N, D), F32),
        grid=(L,),
        in_specs=[full2(x), per_layer(wf_stack), per_layer(eb_stack),
                  full2(ST), full2(Tt), full2(expand), full2(reduce_m),
                  per_layer(bias_stack), per_layer(gnw_stack),
                  per_layer(gnb_stack), per_layer(gnms_stack)],
        out_specs=pl.BlockSpec((N, D), lambda l: (0, 0)),
        scratch_shapes=[pltpu.VMEM((N, D), F32)],
        input_output_aliases={0: 0},
        compiler_params=pltpu.CompilerParams(
            dimension_semantics=("arbitrary",),
            vmem_limit_bytes=_VMEM_LIMIT),
    )(x, wf_stack, eb_stack, ST, Tt, expand, reduce_m, bias_stack,
      gnw_stack, gnb_stack, gnms_stack)


# --------------------------------------------------------------------------- #
# Host-side glue: graph structure -> dense operators (numpy, deterministic)
# --------------------------------------------------------------------------- #
def build_cluster_gcn_operator(cluster, edge_index, n_nodes):
    """Block-diagonal GCN normalized adjacency (intra-cluster edges + self loops)."""
    A = np.zeros((n_nodes, n_nodes), np.float32)
    mask = np.zeros((n_nodes, 1), np.float32)
    src, dst = edge_index
    for c in np.unique(cluster):
        nodes = np.where(cluster == c)[0]
        em = (cluster[src] == c) & (cluster[dst] == c)
        if em.sum() == 0:
            continue  # cluster skipped -> nodes keep original X
        mask[nodes] = 1.0
        s_sub, d_sub = src[em], dst[em]
        deg = np.zeros(n_nodes, np.float64)
        for t in d_sub:
            deg[t] += 1.0
        for n in nodes:
            deg[n] += 1.0  # self loop
        dis = np.where(deg > 0, deg ** -0.5, 0.0)
        for s, t in zip(s_sub, d_sub):
            A[t, s] += dis[s] * dis[t]
        for n in nodes:
            A[n, n] += dis[n] * dis[n]
    return A, mask


def pool_matrix(cluster, num_clusters):
    n = cluster.shape[0]
    P = np.zeros((num_clusters, n), np.float32)
    for c in range(num_clusters):
        idx = np.where(cluster == c)[0]
        if len(idx):
            P[c, idx] = 1.0 / len(idx)
    return P


def build_cluster_graph(cluster, edge_index, edge_attr):
    num_clusters = int(cluster.max()) + 1
    src, dst = edge_index
    edges, attrs = [], []
    for i in range(src.shape[0]):
        cu, cv = int(cluster[src[i]]), int(cluster[dst[i]])
        if cu != cv:
            edges.append([cu, cv])
            attrs.append(edge_attr[i].tolist())
    if len(edges) == 0:
        edges = [[i, i] for i in range(num_clusters)]
        attrs = [[0.0, 0.0] for _ in range(num_clusters)]
    return np.array(edges, np.int64).T, np.array(attrs, np.float32)


def add_self_loops_mean(edge_index, edge_attr, num_nodes):
    """PyG add_self_loops(fill_value='mean'): loop attr = mean of incoming edge attrs."""
    src, dst = edge_index
    ed = edge_attr.shape[1]
    loop_attr = np.zeros((num_nodes, ed), np.float32)
    counts = np.zeros((num_nodes,), np.float32)
    for e in range(src.shape[0]):
        loop_attr[dst[e]] += edge_attr[e]
        counts[dst[e]] += 1.0
    nz = counts > 0
    loop_attr[nz] /= counts[nz, None]
    loops = np.arange(num_nodes)
    new_src = np.concatenate([src, loops])
    new_dst = np.concatenate([dst, loops])
    new_attr = np.concatenate([edge_attr, loop_attr], axis=0)
    return np.stack([new_src, new_dst]), new_attr


def one_hot_matrices(edge_index, num_nodes):
    src, dst = edge_index
    E = src.shape[0]
    S = np.zeros((E, num_nodes), np.float32)
    T = np.zeros((E, num_nodes), np.float32)
    S[np.arange(E), src] = 1.0
    T[np.arange(E), dst] = 1.0
    return S, T


def gat_edge_bias(edge_attr, lin_edge_w, att_edge):
    """(edge_attr @ W_edge).view(E,H,D) * att_edge summed -> lane-dense (E, H)."""
    H, D = att_edge.shape
    e = edge_attr @ lin_edge_w                       # (E, H*D)
    e = e.reshape(-1, H, D)
    return np.einsum("ehd,hd->eh", e, att_edge).astype(np.float32)   # (E, H)


def build_gat_fused_weights(w_h, att_src, att_dst):
    """Fuse per-head weights + folded att vectors into ONE lane-dense matrix:
       [W_all | W_as | W_ad] of shape (D, H*D + 2H), so the whole per-node GAT
       projection is a single MXU pass."""
    w_h = np.asarray(w_h, np.float32)                 # (H, D, D)
    a_s = np.asarray(att_src, np.float32)[:, 0, :]    # (H, D)
    a_d = np.asarray(att_dst, np.float32)[:, 0, :]
    H, D, _ = w_h.shape
    w_all = np.transpose(w_h, (1, 0, 2)).reshape(D, H * D)   # x @ w_all = concat_h(x @ W_h)
    w_as = np.einsum("hij,hj->ih", w_h, a_s)                 # (D, H): att_src per head
    w_ad = np.einsum("hij,hj->ih", w_h, a_d)                 # (D, H): att_dst per head
    return np.concatenate([w_all, w_as, w_ad], axis=1)       # (D, H*D + 2H)


def head_expand_reduce(H, D):
    """expand: (H, H*D) broadcast per-head scalars across that head's lanes.
       reduce: (H*D, D) mean over heads (concat=False).  Both exact in bf16."""
    expand = np.kron(np.eye(H, dtype=np.float32), np.ones((1, D), np.float32))
    reduce = np.kron(np.ones((H, 1), np.float32),
                     np.eye(D, dtype=np.float32)) / np.float32(H)
    return expand, reduce


# --------------------------------------------------------------------------- #
# Parameters (deterministic init), preparation, and forward
# --------------------------------------------------------------------------- #
def init_params(key, n_users, n_items, D, extra_dim, H, num_layers, edge_dim,
                H_cluster=4):
    keys = iter(jax.random.split(key, 64))
    nrm = lambda shape: jax.random.normal(next(keys), shape, F32) * 0.1
    return dict(
        n_users=n_users, n_items=n_items, num_layers=num_layers,
        user_emb=nrm((n_users, D)),
        item_emb=nrm((n_items, D)),
        fuse_w1=nrm((D + extra_dim, 2 * D)), fuse_b1=nrm((1, 2 * D)),
        fuse_w2=nrm((2 * D, D)), fuse_b2=nrm((1, D)),
        gcn_w=nrm((D, D)), gcn_b=nrm((1, D)),
        cgat_w=nrm((H_cluster, D, D)),
        cgat_att_src=nrm((H_cluster, 1, D)), cgat_att_dst=nrm((H_cluster, 1, D)),
        cgat_lin_edge=nrm((edge_dim, H_cluster * D)), cgat_att_edge=nrm((H_cluster, D)),
        cgat_bias=nrm((1, D)),
        gat_w=[nrm((H, D, D)) for _ in range(num_layers)],
        gat_att_src=[nrm((H, 1, D)) for _ in range(num_layers)],
        gat_att_dst=[nrm((H, 1, D)) for _ in range(num_layers)],
        gat_lin_edge=[nrm((edge_dim, H * D)) for _ in range(num_layers)],
        gat_att_edge=[nrm((H, D)) for _ in range(num_layers)],
        gat_bias=[nrm((1, D)) for _ in range(num_layers)],
        gn_w=[jnp.ones((1, D), F32) for _ in range(num_layers)],
        gn_b=[jnp.zeros((1, D), F32) for _ in range(num_layers)],
        gn_ms=[jnp.ones((1, D), F32) for _ in range(num_layers)],
    )


def prepare_params(params):
    """Fold per-head GAT params into one lane-dense fused matrix per layer and
       stack the layer stack's params along a leading axis; bf16 MXU weights."""
    bf = lambda a: jnp.asarray(np.asarray(a), BF16)
    L = params["num_layers"]
    cgat_w = np.asarray(params["cgat_w"])
    H_c, D, _ = cgat_w.shape
    H = np.asarray(params["gat_w"][0]).shape[0]
    exp_c, red_c = head_expand_reduce(H_c, D)
    exp_f, red_f = head_expand_reduce(H, D)

    cgat_wfused = build_gat_fused_weights(
        params["cgat_w"], params["cgat_att_src"], params["cgat_att_dst"])
    gat_wfused = np.stack(
        [build_gat_fused_weights(params["gat_w"][l], params["gat_att_src"][l],
                                 params["gat_att_dst"][l]) for l in range(L)],
        axis=0)                                                   # (L, D, H*D+2H)

    stack1 = lambda xs: jnp.stack([jnp.asarray(x, F32) for x in xs], axis=0)

    return dict(
        n_users=params["n_users"], n_items=params["n_items"], num_layers=L,
        user_emb=params["user_emb"], item_emb=params["item_emb"],
        fuse_w1=bf(params["fuse_w1"]), fuse_b1=params["fuse_b1"],
        fuse_w2=bf(params["fuse_w2"]), fuse_b2=params["fuse_b2"],
        gcn_w=bf(params["gcn_w"]), gcn_b=params["gcn_b"],
        cgat_wfused=bf(cgat_wfused), cgat_bias=params["cgat_bias"],
        cgat_expand=bf(exp_c), cgat_reduce=bf(red_c),
        gat_wfused_stack=bf(gat_wfused),
        gat_bias_stack=stack1(params["gat_bias"]),                # (L, 1, D)
        gat_expand=bf(exp_f), gat_reduce=bf(red_f),
        gn_w_stack=stack1(params["gn_w"]),
        gn_b_stack=stack1(params["gn_b"]),
        gn_ms_stack=stack1(params["gn_ms"]),
    )


def build_graph_ops(cluster, edge_index, edge_attr, n_total, params):
    num_clusters = int(cluster.max()) + 1
    gcn_A, gcn_mask = build_cluster_gcn_operator(cluster, edge_index, n_total)
    P = pool_matrix(cluster, num_clusters)
    assign = np.zeros((n_total, num_clusters), np.float32)
    assign[np.arange(n_total), cluster] = 1.0

    c_ei, c_ea = build_cluster_graph(cluster, edge_index, edge_attr)
    c_ei, c_ea = add_self_loops_mean(c_ei, c_ea, num_clusters)
    cS, cT = one_hot_matrices(c_ei, num_clusters)
    c_eb = gat_edge_bias(c_ea, np.asarray(params["cgat_lin_edge"]),
                         np.asarray(params["cgat_att_edge"]))

    f_ei, f_ea = add_self_loops_mean(edge_index, edge_attr, n_total)
    fS, fT = one_hot_matrices(f_ei, n_total)
    f_eb = np.stack([gat_edge_bias(f_ea, np.asarray(params["gat_lin_edge"][l]),
                                   np.asarray(params["gat_att_edge"][l]))
                     for l in range(params["num_layers"])], axis=0)   # (L, E, H)

    bf = lambda a: jnp.asarray(a, BF16)
    return dict(
        gcn_A=bf(gcn_A), gcn_mask=jnp.asarray(gcn_mask),
        pool_P=bf(P), assign=bf(assign),
        cluster_gat=dict(ST=bf(np.concatenate([cS, cT], axis=1)),
                         Tt=bf(np.ascontiguousarray(cT.T)),
                         edge_bias=jnp.asarray(c_eb)),
        full_gat=dict(ST=bf(np.concatenate([fS, fT], axis=1)),
                      Tt=bf(np.ascontiguousarray(fT.T)),
                      edge_bias_stack=jnp.asarray(f_eb)),
    )


def forward(prep, graph, product_extra_features):
    # Fusion MLP over item features (dropout = identity, eval mode).
    fused_in = jnp.concatenate([prep["item_emb"], product_extra_features], axis=-1)
    enriched = fusion_mlp(fused_in, prep["fuse_w1"], prep["fuse_b1"],
                          prep["fuse_w2"], prep["fuse_b2"])
    X = jnp.concatenate([prep["user_emb"], enriched], axis=0)

    # Local cluster-level GCN + fused per-cluster mean pooling.
    Xc, cluster_embeds = gcn_pool(X, graph["gcn_A"], prep["gcn_w"], prep["gcn_b"],
                                  graph["gcn_mask"], graph["pool_P"])

    # Global GAT over the cluster graph, fused with cluster_info gather + residual.
    cg = graph["cluster_gat"]
    X_combined = cluster_gat_combine(
        cluster_embeds, prep["cgat_wfused"], cg["edge_bias"], cg["ST"], cg["Tt"],
        prep["cgat_expand"], prep["cgat_reduce"], prep["cgat_bias"],
        Xc, graph["assign"])

    # Full-graph GAT + GraphNorm + residual ELU stack: ONE pallas_call,
    # 'arbitrary' layer grid, resident S/T/Tt, aliased in/out state.
    fg = graph["full_gat"]
    X_combined = gat_stack(
        X_combined, prep["gat_wfused_stack"], fg["edge_bias_stack"],
        fg["ST"], fg["Tt"], prep["gat_expand"], prep["gat_reduce"],
        prep["gat_bias_stack"], prep["gn_w_stack"], prep["gn_b_stack"],
        prep["gn_ms_stack"])

    user_final = X_combined[: prep["n_users"]]
    item_final = X_combined[prep["n_users"]:]
    return user_final, item_final


# --------------------------------------------------------------------------- #
if __name__ == "__main__":
    # Small deterministic problem sizes
    n_users, n_items = 6, 10
    n_total = n_users + n_items
    embedding_dim = 32
    extra_dim = 48          # stand-in for 768 + 384 in the original module
    num_heads = 4
    num_layers = 2
    edge_dim = 2
    num_clusters = 4

    # Deterministic synthetic interaction graph (user <-> item, both directions)
    src_list, dst_list, attr_list = [], [], []
    for u in range(n_users):
        for j in range(3):
            it = (u * 3 + j) % n_items
            a = [1.0, float((u * 3 + j) % 3) * 0.5]
            src_list += [u, n_users + it]
            dst_list += [n_users + it, u]
            attr_list += [a, a]
    edge_index = np.stack([np.array(src_list, np.int64), np.array(dst_list, np.int64)])
    edge_attr = np.array(attr_list, np.float32)
    cluster_assignment = (np.arange(n_total) % num_clusters).astype(np.int64)

    key = jax.random.PRNGKey(0)
    k_params, k_feat = jax.random.split(key)
    params = init_params(k_params, n_users, n_items, embedding_dim, extra_dim,
                         num_heads, num_layers, edge_dim)
    prep = prepare_params(params)
    graph = build_graph_ops(cluster_assignment, edge_index, edge_attr, n_total, params)

    product_extra_features = jax.random.normal(k_feat, (n_items, extra_dim), F32)

    fwd = jax.jit(lambda feats: forward(prep, graph, feats))
    user_final, item_final = fwd(product_extra_features)
    jax.block_until_ready((user_final, item_final))

    assert user_final.shape == (n_users, embedding_dim)
    assert item_final.shape == (n_items, embedding_dim)
    assert bool(jnp.all(jnp.isfinite(user_final))) and bool(jnp.all(jnp.isfinite(item_final)))
    print("KERNEL_OK")
</pallas_src>

<mosaic_0001>
module attributes {stable_mosaic.version = 11 : i64} {
  func.func @_fusion_kernel(%arg0: memref<10x80xf32, #tpu.memory_space<vmem>>, %arg1: memref<80x64xbf16, #tpu.memory_space<vmem>>, %arg2: memref<1x64xf32, #tpu.memory_space<vmem>>, %arg3: memref<64x32xbf16, #tpu.memory_space<vmem>>, %arg4: memref<1x32xf32, #tpu.memory_space<vmem>>, %arg5: memref<10x32xf32, #tpu.memory_space<vmem>>) attributes {dimension_semantics = [], scalar_prefetch = 0 : i64, scratch_operands = 0 : i64, tpu.core_type = #tpu.core_type<tc>} {
    %c0 = arith.constant 0 : index
    %c0_0 = arith.constant 0 : index
    %0 = vector.load %arg0[%c0, %c0_0] : memref<10x80xf32, #tpu.memory_space<vmem>>, vector<10x80xf32>
    %1 = arith.truncf %0 : vector<10x80xf32> to vector<10x80xbf16>
    %c0_1 = arith.constant 0 : index
    %c0_2 = arith.constant 0 : index
    %2 = vector.load %arg1[%c0_1, %c0_2] : memref<80x64xbf16, #tpu.memory_space<vmem>>, vector<80x64xbf16>
    %cst = arith.constant dense<0.000000e+00> : vector<10x64xf32>
    %3 = tpu.matmul %1, %2, %cst {dimension_numbers = #tpu.dot_dimension_numbers<[1], [0], [0], [1], [0, 0, 1, 1], [], []>} : vector<10x80xbf16>, vector<80x64xbf16>, vector<10x64xf32> -> vector<10x64xf32>
    %c0_3 = arith.constant 0 : index
    %c0_4 = arith.constant 0 : index
    %4 = vector.load %arg2[%c0_3, %c0_4] : memref<1x64xf32, #tpu.memory_space<vmem>>, vector<1x64xf32>
    %5 = vector.broadcast %4 : vector<1x64xf32> to vector<10x64xf32>
    %6 = arith.addf %3, %5 : vector<10x64xf32>
    %cst_5 = arith.constant 0.000000e+00 : f32
    %7 = vector.broadcast %cst_5 : f32 to vector<10x64xf32>
    %8 = arith.maximumf %6, %7 : vector<10x64xf32>
    %9 = arith.truncf %8 : vector<10x64xf32> to vector<10x64xbf16>
    %c0_6 = arith.constant 0 : index
    %c0_7 = arith.constant 0 : index
    %10 = vector.load %arg3[%c0_6, %c0_7] : memref<64x32xbf16, #tpu.memory_space<vmem>>, vector<64x32xbf16>
    %cst_8 = arith.constant dense<0.000000e+00> : vector<10x32xf32>
    %11 = tpu.matmul %9, %10, %cst_8 {dimension_numbers = #tpu.dot_dimension_numbers<[1], [0], [0], [1], [0, 0, 1, 1], [], []>} : vector<10x64xbf16>, vector<64x32xbf16>, vector<10x32xf32> -> vector<10x32xf32>
    %c0_9 = arith.constant 0 : index
    %c0_10 = arith.constant 0 : index
    %12 = vector.load %arg4[%c0_9, %c0_10] : memref<1x32xf32, #tpu.memory_space<vmem>>, vector<1x32xf32>
    %13 = vector.broadcast %12 : vector<1x32xf32> to vector<10x32xf32>
    %14 = arith.addf %11, %13 : vector<10x32xf32>
    %c0_11 = arith.constant 0 : index
    %c0_12 = arith.constant 0 : index
    %15 = vector.load %arg5[%c0_11, %c0_12] : memref<10x32xf32, #tpu.memory_space<vmem>>, vector<10x32xf32>
    tpu.vector_store %arg5[%c0_11, %c0_12], %14 {strides = array<i32>} : memref<10x32xf32, #tpu.memory_space<vmem>>, vector<10x32xf32>,
    return
  }
}

module attributes {stable_mosaic.version = 11 : i64} {
  func.func @_gcn_pool_kernel(%arg0: memref<16x32xf32, #tpu.memory_space<vmem>>, %arg1: memref<16x16xbf16, #tpu.memory_space<vmem>>, %arg2: memref<32x32xbf16, #tpu.memory_space<vmem>>, %arg3: memref<1x32xf32, #tpu.memory_space<vmem>>, %arg4: memref<16x1xf32, #tpu.memory_space<vmem>>, %arg5: memref<4x16xbf16, #tpu.memory_space<vmem>>, %arg6: memref<16x32xf32, #tpu.memory_space<vmem>>, %arg7: memref<4x32xf32, #tpu.memory_space<vmem>>) attributes {dimension_semantics = [], scalar_prefetch = 0 : i64, scratch_operands = 0 : i64, tpu.core_type = #tpu.core_type<tc>} {
    %c0 = arith.constant 0 : index
    %c0_0 = arith.constant 0 : index
    %0 = vector.load %arg0[%c0, %c0_0] : memref<16x32xf32, #tpu.memory_space<vmem>>, vector<16x32xf32>
    %1 = arith.truncf %0 : vector<16x32xf32> to vector<16x32xbf16>
    %c0_1 = arith.constant 0 : index
    %c0_2 = arith.constant 0 : index
    %2 = vector.load %arg2[%c0_1, %c0_2] : memref<32x32xbf16, #tpu.memory_space<vmem>>, vector<32x32xbf16>
    %cst = arith.constant dense<0.000000e+00> : vector<16x32xf32>
    %3 = tpu.matmul %1, %2, %cst {dimension_numbers = #tpu.dot_dimension_numbers<[1], [0], [0], [1], [0, 0, 1, 1], [], []>} : vector<16x32xbf16>, vector<32x32xbf16>, vector<16x32xf32> -> vector<16x32xf32>
    %c0_3 = arith.constant 0 : index
    %c0_4 = arith.constant 0 : index
    %4 = vector.load %arg1[%c0_3, %c0_4] : memref<16x16xbf16, #tpu.memory_space<vmem>>, vector<16x16xbf16>
    %5 = arith.truncf %3 : vector<16x32xf32> to vector<16x32xbf16>
    %cst_5 = arith.constant dense<0.000000e+00> : vector<16x32xf32>
    %6 = tpu.matmul %4, %5, %cst_5 {dimension_numbers = #tpu.dot_dimension_numbers<[1], [0], [0], [1], [0, 0, 1, 1], [], []>} : vector<16x16xbf16>, vector<16x32xbf16>, vector<16x32xf32> -> vector<16x32xf32>
    %c0_6 = arith.constant 0 : index
    %c0_7 = arith.constant 0 : index
    %7 = vector.load %arg3[%c0_6, %c0_7] : memref<1x32xf32, #tpu.memory_space<vmem>>, vector<1x32xf32>
    %8 = vector.broadcast %7 : vector<1x32xf32> to vector<16x32xf32>
    %9 = arith.addf %6, %8 : vector<16x32xf32>
    %c0_8 = arith.constant 0 : index
    %c0_9 = arith.constant 0 : index
    %10 = vector.load %arg4[%c0_8, %c0_9] : memref<16x1xf32, #tpu.memory_space<vmem>>, vector<16x1xf32>
    %cst_10 = arith.constant 0.000000e+00 : f32
    %11 = vector.broadcast %cst_10 : f32 to vector<16x1xf32>
    %12 = arith.cmpf ogt, %10, %11 : vector<16x1xf32>
    %13 = vector.shape_cast %12 : vector<16x1xi1> to vector<16x1xi1>
    %14 = vector.broadcast %13 : vector<16x1xi1> to vector<16x32xi1>
    %15 = arith.select %14, %9, %0 : vector<16x32xi1>, vector<16x32xf32>
    %c0_11 = arith.constant 0 : index
    %c0_12 = arith.constant 0 : index
    %16 = vector.load %arg6[%c0_11, %c0_12] : memref<16x32xf32, #tpu.memory_space<vmem>>, vector<16x32xf32>
    tpu.vector_store %arg6[%c0_11, %c0_12], %15 {strides = array<i32>} : memref<16x32xf32, #tpu.memory_space<vmem>>, vector<16x32xf32>,
    %c0_13 = arith.constant 0 : index
    %c0_14 = arith.constant 0 : index
    %17 = vector.load %arg5[%c0_13, %c0_14] : memref<4x16xbf16, #tpu.memory_space<vmem>>, vector<4x16xbf16>
    %18 = arith.truncf %15 : vector<16x32xf32> to vector<16x32xbf16>
    %cst_15 = arith.constant dense<0.000000e+00> : vector<4x32xf32>
    %19 = tpu.matmul %17, %18, %cst_15 {dimension_numbers = #tpu.dot_dimension_numbers<[1], [0], [0], [1], [0, 0, 1, 1], [], []>} : vector<4x16xbf16>, vector<16x32xbf16>, vector<4x32xf32> -> vector<4x32xf32>
    %c0_16 = arith.constant 0 : index
    %c0_17 = arith.constant 0 : index
    %20 = vector.load %arg7[%c0_16, %c0_17] : memref<4x32xf32, #tpu.memory_space<vmem>>, vector<4x32xf32>
    tpu.vector_store %arg7[%c0_16, %c0_17], %19 {strides = array<i32>} : memref<4x32xf32, #tpu.memory_space<vmem>>, vector<4x32xf32>,
    return
  }
}

module attributes {stable_mosaic.version = 11 : i64} {
  func.func @_cluster_gat_kernel(%arg0: memref<4x32xf32, #tpu.memory_space<vmem>>, %arg1: memref<32x136xbf16, #tpu.memory_space<vmem>>, %arg2: memref<26x4xf32, #tpu.memory_space<vmem>>, %arg3: memref<26x8xbf16, #tpu.memory_space<vmem>>, %arg4: memref<4x26xbf16, #tpu.memory_space<vmem>>, %arg5: memref<4x128xbf16, #tpu.memory_space<vmem>>, %arg6: memref<128x32xbf16, #tpu.memory_space<vmem>>, %arg7: memref<1x32xf32, #tpu.memory_space<vmem>>, %arg8: memref<16x32xf32, #tpu.memory_space<vmem>>, %arg9: memref<16x4xbf16, #tpu.memory_space<vmem>>, %arg10: memref<16x32xf32, #tpu.memory_space<vmem>>) attributes {dimension_semantics = [], scalar_prefetch = 0 : i64, scratch_operands = 0 : i64, tpu.core_type = #tpu.core_type<tc>} {
    %c0 = arith.constant 0 : index
    %c0_0 = arith.constant 0 : index
    %0 = vector.load %arg0[%c0, %c0_0] : memref<4x32xf32, #tpu.memory_space<vmem>>, vector<4x32xf32>
    %c0_1 = arith.constant 0 : index
    %c0_2 = arith.constant 0 : index
    %1 = vector.load %arg1[%c0_1, %c0_2] : memref<32x136xbf16, #tpu.memory_space<vmem>>, vector<32x136xbf16>
    %c0_3 = arith.constant 0 : index
    %c0_4 = arith.constant 0 : index
    %2 = vector.load %arg2[%c0_3, %c0_4] : memref<26x4xf32, #tpu.memory_space<vmem>>, vector<26x4xf32>
    %c0_5 = arith.constant 0 : index
    %c0_6 = arith.constant 0 : index
    %3 = vector.load %arg3[%c0_5, %c0_6] : memref<26x8xbf16, #tpu.memory_space<vmem>>, vector<26x8xbf16>
    %c0_7 = arith.constant 0 : index
    %c0_8 = arith.constant 0 : index
    %4 = vector.load %arg4[%c0_7, %c0_8] : memref<4x26xbf16, #tpu.memory_space<vmem>>, vector<4x26xbf16>
    %c0_9 = arith.constant 0 : index
    %c0_10 = arith.constant 0 : index
    %5 = vector.load %arg5[%c0_9, %c0_10] : memref<4x128xbf16, #tpu.memory_space<vmem>>, vector<4x128xbf16>
    %c0_11 = arith.constant 0 : index
    %c0_12 = arith.constant 0 : index
    %6 = vector.load %arg6[%c0_11, %c0_12] : memref<128x32xbf16, #tpu.memory_space<vmem>>, vector<128x32xbf16>
    %c0_13 = arith.constant 0 : index
    %c0_14 = arith.constant 0 : index
    %7 = vector.load %arg7[%c0_13, %c0_14] : memref<1x32xf32, #tpu.memory_space<vmem>>, vector<1x32xf32>
    %8 = arith.truncf %0 : vector<4x32xf32> to vector<4x32xbf16>
    %cst = arith.constant dense<0.000000e+00> : vector<4x136xf32>
    %9 = tpu.matmul %8, %1, %cst {dimension_numbers = #tpu.dot_dimension_numbers<[1], [0], [0], [1], [0, 0, 1, 1], [], []>} : vector<4x32xbf16>, vector<32x136xbf16>, vector<4x136xf32> -> vector<4x136xf32>
    %10 = vector.extract_strided_slice %9 {offsets = [0, 0], sizes = [4, 132], strides = [1, 1]} : vector<4x136xf32> to vector<4x132xf32>
    %11 = vector.extract_strided_slice %9 {offsets = [0, 132], sizes = [4, 4], strides = [1, 1]} : vector<4x136xf32> to vector<4x4xf32>
    %cst_15 = arith.constant 0.000000e+00 : f32
    %12 = vector.broadcast %cst_15 : f32 to vector<4x128xf32>
    %13 = tpu.concatenate %12, %11 in 1 : vector<4x128xf32>, vector<4x4xf32> -> vector<4x132xf32>
    %14 = tpu.concatenate %10, %13 in 0 : vector<4x132xf32>, vector<4x132xf32> -> vector<8x132xf32>
    %15 = arith.truncf %14 : vector<8x132xf32> to vector<8x132xbf16>
    %cst_16 = arith.constant dense<0.000000e+00> : vector<26x132xf32>
    %16 = tpu.matmul %3, %15, %cst_16 {dimension_numbers = #tpu.dot_dimension_numbers<[1], [0], [0], [1], [0, 0, 1, 1], [], []>} : vector<26x8xbf16>, vector<8x132xbf16>, vector<26x132xf32> -> vector<26x132xf32>
    %17 = vector.extract_strided_slice %16 {offsets = [0, 0], sizes = [26, 128], strides = [1, 1]} : vector<26x132xf32> to vector<26x128xf32>
    %18 = vector.extract_strided_slice %16 {offsets = [0, 128], sizes = [26, 4], strides = [1, 1]} : vector<26x132xf32> to vector<26x4xf32>
    %19 = arith.addf %18, %2 : vector<26x4xf32>
    %cst_17 = arith.constant 0.000000e+00 : f32
    %20 = vector.broadcast %cst_17 : f32 to vector<26x4xf32>
    %21 = arith.cmpf ogt, %19, %20 : vector<26x4xf32>
    %cst_18 = arith.constant 2.000000e-01 : f32
    %22 = vector.broadcast %cst_18 : f32 to vector<26x4xf32>
    %23 = arith.mulf %22, %19 : vector<26x4xf32>
    %24 = arith.select %21, %19, %23 : vector<26x4xi1>, vector<26x4xf32>
    %cst_19 = arith.constant dense<0xFF800000> : vector<4xf32>
    %25 = vector.multi_reduction <maximumf>, %24, %cst_19 [0] : vector<26x4xf32> to vector<4xf32>
    %26 = vector.shape_cast %25 : vector<4xf32> to vector<1x4xf32>
    %27 = vector.broadcast %26 : vector<1x4xf32> to vector<26x4xf32>
    %28 = arith.subf %24, %27 : vector<26x4xf32>
    %29 = math.exp %28 : vector<26x4xf32>
    %30 = arith.truncf %29 : vector<26x4xf32> to vector<26x4xbf16>
    %cst_20 = arith.constant dense<0.000000e+00> : vector<26x128xf32>
    %31 = tpu.matmul %30, %5, %cst_20 {dimension_numbers = #tpu.dot_dimension_numbers<[1], [0], [0], [1], [0, 0, 1, 1], [], []>} : vector<26x4xbf16>, vector<4x128xbf16>, vector<26x128xf32> -> vector<26x128xf32>
    %32 = arith.mulf %31, %17 : vector<26x128xf32>
    %33 = tpu.concatenate %32, %29 in 1 : vector<26x128xf32>, vector<26x4xf32> -> vector<26x132xf32>
    %34 = arith.truncf %33 : vector<26x132xf32> to vector<26x132xbf16>
    %cst_21 = arith.constant dense<0.000000e+00> : vector<4x132xf32>
    %35 = tpu.matmul %4, %34, %cst_21 {dimension_numbers = #tpu.dot_dimension_numbers<[1], [0], [0], [1], [0, 0, 1, 1], [], []>} : vector<4x26xbf16>, vector<26x132xbf16>, vector<4x132xf32> -> vector<4x132xf32>
    %36 = vector.extract_strided_slice %35 {offsets = [0, 0], sizes = [4, 128], strides = [1, 1]} : vector<4x132xf32> to vector<4x128xf32>
    %37 = vector.extract_strided_slice %35 {offsets = [0, 128], sizes = [4, 4], strides = [1, 1]} : vector<4x132xf32> to vector<4x4xf32>
    %cst_22 = arith.constant 9.99999968E-21 : f32
    %38 = vector.broadcast %cst_22 : f32 to vector<4x4xf32>
    %39 = arith.addf %37, %38 : vector<4x4xf32>
    %40 = tpu.reciprocal %39 {approx = true} : vector<4x4xf32> -> vector<4x4xf32>
    %41 = arith.truncf %40 : vector<4x4xf32> to vector<4x4xbf16>
    %cst_23 = arith.constant dense<0.000000e+00> : vector<4x128xf32>
    %42 = tpu.matmul %41, %5, %cst_23 {dimension_numbers = #tpu.dot_dimension_numbers<[1], [0], [0], [1], [0, 0, 1, 1], [], []>} : vector<4x4xbf16>, vector<4x128xbf16>, vector<4x128xf32> -> vector<4x128xf32>
    %43 = arith.mulf %36, %42 : vector<4x128xf32>
    %44 = arith.truncf %43 : vector<4x128xf32> to vector<4x128xbf16>
    %cst_24 = arith.constant dense<0.000000e+00> : vector<4x32xf32>
    %45 = tpu.matmul %44, %6, %cst_24 {dimension_numbers = #tpu.dot_dimension_numbers<[1], [0], [0], [1], [0, 0, 1, 1], [], []>} : vector<4x128xbf16>, vector<128x32xbf16>, vector<4x32xf32> -> vector<4x32xf32>
    %46 = vector.broadcast %7 : vector<1x32xf32> to vector<4x32xf32>
    %47 = arith.addf %45, %46 : vector<4x32xf32>
    %c0_25 = arith.constant 0 : index
    %c0_26 = arith.constant 0 : index
    %48 = vector.load %arg8[%c0_25, %c0_26] : memref<16x32xf32, #tpu.memory_space<vmem>>, vector<16x32xf32>
    %c0_27 = arith.constant 0 : index
    %c0_28 = arith.constant 0 : index
    %49 = vector.load %arg9[%c0_27, %c0_28] : memref<16x4xbf16, #tpu.memory_space<vmem>>, vector<16x4xbf16>
    %50 = arith.truncf %47 : vector<4x32xf32> to vector<4x32xbf16>
    %cst_29 = arith.constant dense<0.000000e+00> : vector<16x32xf32>
    %51 = tpu.matmul %49, %50, %cst_29 {dimension_numbers = #tpu.dot_dimension_numbers<[1], [0], [0], [1], [0, 0, 1, 1], [], []>} : vector<16x4xbf16>, vector<4x32xbf16>, vector<16x32xf32> -> vector<16x32xf32>
    %52 = arith.addf %48, %51 : vector<16x32xf32>
    %c0_30 = arith.constant 0 : index
    %c0_31 = arith.constant 0 : index
    %53 = vector.load %arg10[%c0_30, %c0_31] : memref<16x32xf32, #tpu.memory_space<vmem>>, vector<16x32xf32>
    tpu.vector_store %arg10[%c0_30, %c0_31], %52 {strides = array<i32>} : memref<16x32xf32, #tpu.memory_space<vmem>>, vector<16x32xf32>,
    return
  }
}

module attributes {stable_mosaic.version = 11 : i64} {
  func.func @_gat_stack_kernel(%arg0: i32, %arg1: memref<16x32xf32, #tpu.memory_space<vmem>>, %arg2: memref<1x32x136xbf16, #tpu.memory_space<vmem>>, %arg3: memref<1x52x4xf32, #tpu.memory_space<vmem>>, %arg4: memref<52x32xbf16, #tpu.memory_space<vmem>>, %arg5: memref<16x52xbf16, #tpu.memory_space<vmem>>, %arg6: memref<4x128xbf16, #tpu.memory_space<vmem>>, %arg7: memref<128x32xbf16, #tpu.memory_space<vmem>>, %arg8: memref<1x1x32xf32, #tpu.memory_space<vmem>>, %arg9: memref<1x1x32xf32, #tpu.memory_space<vmem>>, %arg10: memref<1x1x32xf32, #tpu.memory_space<vmem>>, %arg11: memref<1x1x32xf32, #tpu.memory_space<vmem>>, %arg12: memref<16x32xf32, #tpu.memory_space<vmem>>, %arg13: memref<16x32xf32, #tpu.memory_space<vmem>>) attributes {dimension_semantics = [#tpu.dimension_semantics<arbitrary>], iteration_bounds = array<i64: 2>, scalar_prefetch = 0 : i64, scratch_operands = 1 : i64, tpu.core_type = #tpu.core_type<tc>, window_params = [{pipeline_mode = #tpu.pipeline_mode<synchronous>, transform_indices = @transform_0, window_bounds = array<i64: 16, 32>}, {transform_indices = @transform_1, window_bounds = array<i64: 1, 32, 136>}, {transform_indices = @transform_2, window_bounds = array<i64: 1, 52, 4>}, {pipeline_mode = #tpu.pipeline_mode<synchronous>, transform_indices = @transform_3, window_bounds = array<i64: 52, 32>}, {pipeline_mode = #tpu.pipeline_mode<synchronous>, transform_indices = @transform_4, window_bounds = array<i64: 16, 52>}, {pipeline_mode = #tpu.pipeline_mode<synchronous>, transform_indices = @transform_5, window_bounds = array<i64: 4, 128>}, {pipeline_mode = #tpu.pipeline_mode<synchronous>, transform_indices = @transform_6, window_bounds = array<i64: 128, 32>}, {transform_indices = @transform_7, window_bounds = array<i64: 1, 1, 32>}, {transform_indices = @transform_8, window_bounds = array<i64: 1, 1, 32>}, {transform_indices = @transform_9, window_bounds = array<i64: 1, 1, 32>}, {transform_indices = @transform_10, window_bounds = array<i64: 1, 1, 32>}, {pipeline_mode = #tpu.pipeline_mode<synchronous>, transform_indices = @transform_11, window_bounds = array<i64: 16, 32>}]} {
    %c0_i32 = arith.constant 0 : i32
    %0 = arith.cmpi eq, %arg0, %c0_i32 : i32
    %1 = arith.extui %0 : i1 to i32
    %c0_i32_0 = arith.constant 0 : i32
    %2 = arith.cmpi ne, %1, %c0_i32_0 : i32
    scf.if %2 {
      %c0_49 = arith.constant 0 : index
      %c0_50 = arith.constant 0 : index
      %90 = vector.load %arg1[%c0_49, %c0_50] : memref<16x32xf32, #tpu.memory_space<vmem>>, vector<16x32xf32>
      %c0_51 = arith.constant 0 : index
      %c0_52 = arith.constant 0 : index
      %91 = vector.load %arg13[%c0_51, %c0_52] : memref<16x32xf32, #tpu.memory_space<vmem>>, vector<16x32xf32>
      tpu.vector_store %arg13[%c0_51, %c0_52], %90 {strides = array<i32>} : memref<16x32xf32, #tpu.memory_space<vmem>>, vector<16x32xf32>,
    } else {
    }
    %c0 = arith.constant 0 : index
    %c0_1 = arith.constant 0 : index
    %3 = vector.load %arg13[%c0, %c0_1] : memref<16x32xf32, #tpu.memory_space<vmem>>, vector<16x32xf32>
    %c0_2 = arith.constant 0 : index
    %c0_3 = arith.constant 0 : index
    %c0_4 = arith.constant 0 : index
    %4 = vector.load %arg2[%c0_2, %c0_3, %c0_4] : memref<1x32x136xbf16, #tpu.memory_space<vmem>>, vector<1x32x136xbf16>
    %5 = vector.shape_cast %4 : vector<1x32x136xbf16> to vector<32x136xbf16>
    %c0_5 = arith.constant 0 : index
    %c0_6 = arith.constant 0 : index
    %c0_7 = arith.constant 0 : index
    %6 = vector.load %arg3[%c0_5, %c0_6, %c0_7] : memref<1x52x4xf32, #tpu.memory_space<vmem>>, vector<1x52x4xf32>
    %7 = vector.shape_cast %6 : vector<1x52x4xf32> to vector<52x4xf32>
    %c0_8 = arith.constant 0 : index
    %c0_9 = arith.constant 0 : index
    %8 = vector.load %arg4[%c0_8, %c0_9] : memref<52x32xbf16, #tpu.memory_space<vmem>>, vector<52x32xbf16>
    %c0_10 = arith.constant 0 : index
    %c0_11 = arith.constant 0 : index
    %9 = vector.load %arg5[%c0_10, %c0_11] : memref<16x52xbf16, #tpu.memory_space<vmem>>, vector<16x52xbf16>
    %c0_12 = arith.constant 0 : index
    %c0_13 = arith.constant 0 : index
    %10 = vector.load %arg6[%c0_12, %c0_13] : memref<4x128xbf16, #tpu.memory_space<vmem>>, vector<4x128xbf16>
    %c0_14 = arith.constant 0 : index
    %c0_15 = arith.constant 0 : index
    %11 = vector.load %arg7[%c0_14, %c0_15] : memref<128x32xbf16, #tpu.memory_space<vmem>>, vector<128x32xbf16>
    %c0_16 = arith.constant 0 : index
    %c0_17 = arith.constant 0 : index
    %c0_18 = arith.constant 0 : index
    %12 = vector.load %arg8[%c0_16, %c0_17, %c0_18] : memref<1x1x32xf32, #tpu.memory_space<vmem>>, vector<1x1x32xf32>
    %13 = vector.shape_cast %12 : vector<1x1x32xf32> to vector<1x32xf32>
    %14 = arith.truncf %3 : vector<16x32xf32> to vector<16x32xbf16>
    %cst = arith.constant dense<0.000000e+00> : vector<16x136xf32>
    %15 = tpu.matmul %14, %5, %cst {dimension_numbers = #tpu.dot_dimension_numbers<[1], [0], [0], [1], [0, 0, 1, 1], [], []>} : vector<16x32xbf16>, vector<32x136xbf16>, vector<16x136xf32> -> vector<16x136xf32>
    %16 = vector.extract_strided_slice %15 {offsets = [0, 0], sizes = [16, 132], strides = [1, 1]} : vector<16x136xf32> to vector<16x132xf32>
    %17 = vector.extract_strided_slice %15 {offsets = [0, 132], sizes = [16, 4], strides = [1, 1]} : vector<16x136xf32> to vector<16x4xf32>
    %cst_19 = arith.constant 0.000000e+00 : f32
    %18 = vector.broadcast %cst_19 : f32 to vector<16x128xf32>
    %19 = tpu.concatenate %18, %17 in 1 : vector<16x128xf32>, vector<16x4xf32> -> vector<16x132xf32>
    %20 = tpu.concatenate %16, %19 in 0 : vector<16x132xf32>, vector<16x132xf32> -> vector<32x132xf32>
    %21 = arith.truncf %20 : vector<32x132xf32> to vector<32x132xbf16>
    %cst_20 = arith.constant dense<0.000000e+00> : vector<52x132xf32>
    %22 = tpu.matmul %8, %21, %cst_20 {dimension_numbers = #tpu.dot_dimension_numbers<[1], [0], [0], [1], [0, 0, 1, 1], [], []>} : vector<52x32xbf16>, vector<32x132xbf16>, vector<52x132xf32> -> vector<52x132xf32>
    %23 = vector.extract_strided_slice %22 {offsets = [0, 0], sizes = [52, 128], strides = [1, 1]} : vector<52x132xf32> to vector<52x128xf32>
    %24 = vector.extract_strided_slice %22 {offsets = [0, 128], sizes = [52, 4], strides = [1, 1]} : vector<52x132xf32> to vector<52x4xf32>
    %25 = arith.addf %24, %7 : vector<52x4xf32>
    %cst_21 = arith.constant 0.000000e+00 : f32
    %26 = vector.broadcast %cst_21 : f32 to vector<52x4xf32>
    %27 = arith.cmpf ogt, %25, %26 : vector<52x4xf32>
    %cst_22 = arith.constant 2.000000e-01 : f32
    %28 = vector.broadcast %cst_22 : f32 to vector<52x4xf32>
    %29 = arith.mulf %28, %25 : vector<52x4xf32>
    %30 = arith.select %27, %25, %29 : vector<52x4xi1>, vector<52x4xf32>
    %cst_23 = arith.constant dense<0xFF800000> : vector<4xf32>
    %31 = vector.multi_reduction <maximumf>, %30, %cst_23 [0] : vector<52x4xf32> to vector<4xf32>
    %32 = vector.shape_cast %31 : vector<4xf32> to vector<1x4xf32>
    %33 = vector.broadcast %32 : vector<1x4xf32> to vector<52x4xf32>
    %34 = arith.subf %30, %33 : vector<52x4xf32>
    %35 = math.exp %34 : vector<52x4xf32>
    %36 = arith.truncf %35 : vector<52x4xf32> to vector<52x4xbf16>
    %cst_24 = arith.constant dense<0.000000e+00> : vector<52x128xf32>
    %37 = tpu.matmul %36, %10, %cst_24 {dimension_numbers = #tpu.dot_dimension_numbers<[1], [0], [0], [1], [0, 0, 1, 1], [], []>} : vector<52x4xbf16>, vector<4x128xbf16>, vector<52x128xf32> -> vector<52x128xf32>
    %38 = arith.mulf %37, %23 : vector<52x128xf32>
    %39 = tpu.concatenate %38, %35 in 1 : vector<52x128xf32>, vector<52x4xf32> -> vector<52x132xf32>
    %40 = arith.truncf %39 : vector<52x132xf32> to vector<52x132xbf16>
    %cst_25 = arith.constant dense<0.000000e+00> : vector<16x132xf32>
    %41 = tpu.matmul %9, %40, %cst_25 {dimension_numbers = #tpu.dot_dimension_numbers<[1], [0], [0], [1], [0, 0, 1, 1], [], []>} : vector<16x52xbf16>, vector<52x132xbf16>, vector<16x132xf32> -> vector<16x132xf32>
    %42 = vector.extract_strided_slice %41 {offsets = [0, 0], sizes = [16, 128], strides = [1, 1]} : vector<16x132xf32> to vector<16x128xf32>
    %43 = vector.extract_strided_slice %41 {offsets = [0, 128], sizes = [16, 4], strides = [1, 1]} : vector<16x132xf32> to vector<16x4xf32>
    %cst_26 = arith.constant 9.99999968E-21 : f32
    %44 = vector.broadcast %cst_26 : f32 to vector<16x4xf32>
    %45 = arith.addf %43, %44 : vector<16x4xf32>
    %46 = tpu.reciprocal %45 {approx = true} : vector<16x4xf32> -> vector<16x4xf32>
    %47 = arith.truncf %46 : vector<16x4xf32> to vector<16x4xbf16>
    %cst_27 = arith.constant dense<0.000000e+00> : vector<16x128xf32>
    %48 = tpu.matmul %47, %10, %cst_27 {dimension_numbers = #tpu.dot_dimension_numbers<[1], [0], [0], [1], [0, 0, 1, 1], [], []>} : vector<16x4xbf16>, vector<4x128xbf16>, vector<16x128xf32> -> vector<16x128xf32>
    %49 = arith.mulf %42, %48 : vector<16x128xf32>
    %50 = arith.truncf %49 : vector<16x128xf32> to vector<16x128xbf16>
    %cst_28 = arith.constant dense<0.000000e+00> : vector<16x32xf32>
    %51 = tpu.matmul %50, %11, %cst_28 {dimension_numbers = #tpu.dot_dimension_numbers<[1], [0], [0], [1], [0, 0, 1, 1], [], []>} : vector<16x128xbf16>, vector<128x32xbf16>, vector<16x32xf32> -> vector<16x32xf32>
    %52 = vector.broadcast %13 : vector<1x32xf32> to vector<16x32xf32>
    %53 = arith.addf %51, %52 : vector<16x32xf32>
    %cst_29 = arith.constant dense<0.000000e+00> : vector<32xf32>
    %54 = vector.multi_reduction <add>, %53, %cst_29 [0] : vector<16x32xf32> to vector<32xf32>
    %55 = vector.shape_cast %54 : vector<32xf32> to vector<1x32xf32>
    %cst_30 = arith.constant 1.600000e+01 : f32
    %56 = vector.broadcast %cst_30 : f32 to vector<1x32xf32>
    %57 = arith.divf %55, %56 : vector<1x32xf32>
    %c0_31 = arith.constant 0 : index
    %c0_32 = arith.constant 0 : index
    %c0_33 = arith.constant 0 : index
    %58 = vector.load %arg11[%c0_31, %c0_32, %c0_33] : memref<1x1x32xf32, #tpu.memory_space<vmem>>, vector<1x1x32xf32>
    %59 = vector.shape_cast %58 : vector<1x1x32xf32> to vector<1x32xf32>
    %60 = arith.mulf %57, %59 : vector<1x32xf32>
    %61 = vector.broadcast %60 : vector<1x32xf32> to vector<16x32xf32>
    %62 = arith.subf %53, %61 : vector<16x32xf32>
    %63 = arith.mulf %62, %62 : vector<16x32xf32>
    %cst_34 = arith.constant dense<0.000000e+00> : vector<32xf32>
    %64 = vector.multi_reduction <add>, %63, %cst_34 [0] : vector<16x32xf32> to vector<32xf32>
    %65 = vector.shape_cast %64 : vector<32xf32> to vector<1x32xf32>
    %cst_35 = arith.constant 1.600000e+01 : f32
    %66 = vector.broadcast %cst_35 : f32 to vector<1x32xf32>
    %67 = arith.divf %65, %66 : vector<1x32xf32>
    %c0_36 = arith.constant 0 : index
    %c0_37 = arith.constant 0 : index
    %c0_38 = arith.constant 0 : index
    %68 = vector.load %arg9[%c0_36, %c0_37, %c0_38] : memref<1x1x32xf32, #tpu.memory_space<vmem>>, vector<1x1x32xf32>
    %69 = vector.shape_cast %68 : vector<1x1x32xf32> to vector<1x32xf32>
    %70 = vector.broadcast %69 : vector<1x32xf32> to vector<16x32xf32>
    %71 = arith.mulf %70, %62 : vector<16x32xf32>
    %cst_39 = arith.constant 9.99999974E-6 : f32
    %72 = vector.broadcast %cst_39 : f32 to vector<1x32xf32>
    %73 = arith.addf %67, %72 : vector<1x32xf32>
    %74 = math.rsqrt %73 : vector<1x32xf32>
    %75 = vector.broadcast %74 : vector<1x32xf32> to vector<16x32xf32>
    %76 = arith.mulf %71, %75 : vector<16x32xf32>
    %c0_40 = arith.constant 0 : index
    %c0_41 = arith.constant 0 : index
    %c0_42 = arith.constant 0 : index
    %77 = vector.load %arg10[%c0_40, %c0_41, %c0_42] : memref<1x1x32xf32, #tpu.memory_space<vmem>>, vector<1x1x32xf32>
    %78 = vector.shape_cast %77 : vector<1x1x32xf32> to vector<1x32xf32>
    %79 = vector.broadcast %78 : vector<1x32xf32> to vector<16x32xf32>
    %80 = arith.addf %76, %79 : vector<16x32xf32>
    %81 = arith.addf %80, %3 : vector<16x32xf32>
    %cst_43 = arith.constant 0.000000e+00 : f32
    %82 = vector.broadcast %cst_43 : f32 to vector<16x32xf32>
    %83 = arith.cmpf ogt, %81, %82 : vector<16x32xf32>
    %84 = math.exp %81 : vector<16x32xf32>
    %cst_44 = arith.constant 1.000000e+00 : f32
    %85 = vector.broadcast %cst_44 : f32 to vector<16x32xf32>
    %86 = arith.subf %84, %85 : vector<16x32xf32>
    %87 = arith.select %83, %81, %86 : vector<16x32xi1>, vector<16x32xf32>
    %c0_45 = arith.constant 0 : index
    %c0_46 = arith.constant 0 : index
    %88 = vector.load %arg13[%c0_45, %c0_46] : memref<16x32xf32, #tpu.memory_space<vmem>>, vector<16x32xf32>
    tpu.vector_store %arg13[%c0_45, %c0_46], %87 {strides = array<i32>} : memref<16x32xf32, #tpu.memory_space<vmem>>, vector<16x32xf32>,
    %c0_47 = arith.constant 0 : index
    %c0_48 = arith.constant 0 : index
    %89 = vector.load %arg12[%c0_47, %c0_48] : memref<16x32xf32, #tpu.memory_space<vmem>>, vector<16x32xf32>
    tpu.vector_store %arg12[%c0_47, %c0_48], %87 {strides = array<i32>} : memref<16x32xf32, #tpu.memory_space<vmem>>, vector<16x32xf32>,
    return
  }
  func.func @transform_0(%arg0: i32) -> (i32, i32) {
    %c0_i32 = arith.constant 0 : i32
    %c0_i32_0 = arith.constant 0 : i32
    %c0_i32_1 = arith.constant 0 : i32
    return %c0_i32, %c0_i32_0 : i32, i32
  }
  func.func @transform_1(%arg0: i32) -> (i32, i32, i32) {
    %c0_i32 = arith.constant 0 : i32
    %c0_i32_0 = arith.constant 0 : i32
    %c0_i32_1 = arith.constant 0 : i32
    return %arg0, %c0_i32, %c0_i32_0 : i32, i32, i32
  }
  func.func @transform_2(%arg0: i32) -> (i32, i32, i32) {
    %c0_i32 = arith.constant 0 : i32
    %c0_i32_0 = arith.constant 0 : i32
    %c0_i32_1 = arith.constant 0 : i32
    return %arg0, %c0_i32, %c0_i32_0 : i32, i32, i32
  }
  func.func @transform_3(%arg0: i32) -> (i32, i32) {
    %c0_i32 = arith.constant 0 : i32
    %c0_i32_0 = arith.constant 0 : i32
    %c0_i32_1 = arith.constant 0 : i32
    return %c0_i32, %c0_i32_0 : i32, i32
  }
  func.func @transform_4(%arg0: i32) -> (i32, i32) {
    %c0_i32 = arith.constant 0 : i32
    %c0_i32_0 = arith.constant 0 : i32
    %c0_i32_1 = arith.constant 0 : i32
    return %c0_i32, %c0_i32_0 : i32, i32
  }
  func.func @transform_5(%arg0: i32) -> (i32, i32) {
    %c0_i32 = arith.constant 0 : i32
    %c0_i32_0 = arith.constant 0 : i32
    %c0_i32_1 = arith.constant 0 : i32
    return %c0_i32, %c0_i32_0 : i32, i32
  }
  func.func @transform_6(%arg0: i32) -> (i32, i32) {
    %c0_i32 = arith.constant 0 : i32
    %c0_i32_0 = arith.constant 0 : i32
    %c0_i32_1 = arith.constant 0 : i32
    return %c0_i32, %c0_i32_0 : i32, i32
  }
  func.func @transform_7(%arg0: i32) -> (i32, i32, i32) {
    %c0_i32 = arith.constant 0 : i32
    %c0_i32_0 = arith.constant 0 : i32
    %c0_i32_1 = arith.constant 0 : i32
    return %arg0, %c0_i32, %c0_i32_0 : i32, i32, i32
  }
  func.func @transform_8(%arg0: i32) -> (i32, i32, i32) {
    %c0_i32 = arith.constant 0 : i32
    %c0_i32_0 = arith.constant 0 : i32
    %c0_i32_1 = arith.constant 0 : i32
    return %arg0, %c0_i32, %c0_i32_0 : i32, i32, i32
  }
  func.func @transform_9(%arg0: i32) -> (i32, i32, i32) {
    %c0_i32 = arith.constant 0 : i32
    %c0_i32_0 = arith.constant 0 : i32
    %c0_i32_1 = arith.constant 0 : i32
    return %arg0, %c0_i32, %c0_i32_0 : i32, i32, i32
  }
  func.func @transform_10(%arg0: i32) -> (i32, i32, i32) {
    %c0_i32 = arith.constant 0 : i32
    %c0_i32_0 = arith.constant 0 : i32
    %c0_i32_1 = arith.constant 0 : i32
    return %arg0, %c0_i32, %c0_i32_0 : i32, i32, i32
  }
  func.func @transform_11(%arg0: i32) -> (i32, i32) {
    %c0_i32 = arith.constant 0 : i32
    %c0_i32_0 = arith.constant 0 : i32
    %c0_i32_1 = arith.constant 0 : i32
    return %c0_i32, %c0_i32_0 : i32, i32
  }
}

</mosaic_0001>

<bundles_post_ra>
// kernel: _lambda_.4
= control target key start
LH: loop header
LB: loop body
LE: loop exit
PB: predicated region body
PF: predicated region fallthrough
CT: control target
= control target key end

     0   :  { %10 = vsyncpa [#allocation3], 0  ;;  %s308_s18 = smov [#allocation2]   ;;  %s386_s0 = inlined_call_operand.vmem [shape: f32[10,80], index: 0, kind: input, shape index: {}]   ;;  %s387_s1 = inlined_call_operand.vmem [shape: bf16[80,64], index: 1, kind: input, shape index: {}]   ;;  %s388_s2 = inlined_call_operand.vmem [shape: f32[1,64], index: 2, kind: input, shape index: {}]   ;;  %s389_s3 = inlined_call_operand.vmem [shape: bf16[64,32], index: 3, kind: input, shape index: {}]   ;;  %s390_s4 = inlined_call_operand.hbm [shape: f32[1,32], index: 4, kind: input, shape index: {}]   ;;  %s391_s5 = inlined_call_operand.vmem [shape: f32[10,32], index: 5, kind: output, shape index: {}]  }
   0x1   :  { %s25_s19 = sshll.u32 %s308_s18, 4  ;;  %s26_s19 = int_to_ptr.vmem [resolvable:$true] %s25_s19 }
   0x2   :  { %s294_s20 = scalar_lea.vmem %s26_s19, 16  ;;  %s298_s21 = scalar_lea.vmem %s26_s19, 32 }
   0x3   :  { %p295_p0 = scmp.ne.s32.totalorder %s26_s19, %s294_s20  ;;  %p299_p1 = scmp.lt.s32.totalorder %s26_s19, %s26_s19 }
   0x4   :  { %p300_p2 = scmp.lt.s32.totalorder %s298_s21, %s294_s20 }
   0x6   :  { %p301_p3 = por %p300_p2, %p299_p1 }
   0x8   :  { %p302_p4 = pnand %p301_p3, %p295_p0 }
   0xa   :  { %305 = shalt.err (!%p302_p4)
}
   0xb   :  { %28 = dma.hbm_to_vmem [thread:$0]  %s390_s4, 16, %s26_s19, [#allocation3]  }
   0xc   :  { %306 = dma.done.wait [#allocation3], 16  }
   0xd   :  { %307 = vsyncadd [#allocation3], 4294967280  ;;  %v309_v0 = vmov 0.0   ;;  %vm310_vm0 = vmmov 0   ;;  %v277_v1 = vld [vmem:[%s387_s1 + $0x20] sm:$0xff]   ;;  %v278_v2 = vld [vmem:[%s387_s1 + $0x18] sm:$0xff]  }
   0xe   :  { %248 = vmatprep.subr.bf16.mxu0 %v309_v0  ;;  %258 = vmatprep.mubr.msk.bf16.mxu0 %vm310_vm0, %v309_v0  ;;  %v279_v3 = vld [vmem:[%s387_s1 + $0x10] sm:$0xff]   ;;  %v282_v4 = vld [vmem:[%s389_s3 + $0x18] sm:$0xff]   ;;  %v280_v5 = vld [vmem:[%s387_s1 + $0x8] sm:$0xff]   ;;  %vm83_vm1 = vcmask 654336   ;;  %vm170_vm2 = vcmask 523264   ;;  %vm215_vm3 = vcmask 261120  }
   0xf   :  { %262 = vmatprep.subr.bf16.mxu1 %v309_v0  ;;  %270 = vmatprep.mubr.msk.bf16.mxu1 %vm310_vm0, %v309_v0  ;;  %v281_v6 = vld [vmem:[%s387_s1] sm:$0xff]   ;;  %v34_v8 = vld [vmem:[%s386_s0 + $0x8] sm:$0x3]  ;;  %v283_v10 = vld [vmem:[%s389_s3 + $0x10] sm:$0xff]   ;;  %vm217_vm4 = vcmask 254976  }
  0x10   :  { %249 = vmatpush3.bf16.msra.mxu0 %v277_v1  ;;  %263 = vmatpush3.bf16.msra.mxu1 %v282_v4  ;;  %v33_v7 = vld [vmem:[%s386_s0] sm:$0xff]  ;;  %v284_v11 = vld [vmem:[%s389_s3 + $0x8] sm:$0xff]  }
  0x11   :  { %250 = vmatprep.subr.bf16.mxu0 %v309_v0  ;;  %264 = vmatprep.subr.bf16.mxu1 %v309_v0  ;;  %v35_v9 = vpack.c.bf16 %v34_v8, %v33_v7  ;;  %v285_v12 = vld [vmem:[%s389_s3] sm:$0xff]  }
  0x12   :  { %v224_v13 = vld [vmem:[%s388_s2] ss:$0 sm:$0xff] }
  0x13   :  { %v231_v23 = vld [vmem:[#allocation2] ss:$0 sm:$0xff] }
  0x14   :  { %251 = vmatpush3.bf16.msra.mxu0 %v278_v2  ;;  %265 = vmatpush3.bf16.msra.mxu1 %v283_v10 }
  0x15   :  { %252 = vmatprep.subr.bf16.mxu0 %v309_v0  ;;  %266 = vmatprep.subr.bf16.mxu1 %v309_v0 }
  0x18   :  { %253 = vmatpush3.bf16.msra.mxu0 %v279_v3  ;;  %267 = vmatpush3.bf16.msra.mxu1 %v284_v11 }
  0x19   :  { %254 = vmatprep.subr.bf16.mxu0 %v309_v0  ;;  %268 = vmatprep.subr.bf16.mxu1 %v309_v0 }
  0x1c   :  { %255 = vmatpush3.bf16.msra.mxu0 %v280_v5  ;;  %269 = vmatpush3.bf16.msra.mxu1 %v285_v12 }
  0x1d   :  { %256 = vmatprep.subr.bf16.mxu0 %v309_v0 }
  0x20   :  { %257 = vmatpush3.bf16.msra.mxu0 %v281_v6 }
  0x23   :  { %259 = vmatmul.mubr.msk.bf16.vlgmr.msra.gmra.mxu0 %vm83_vm1, %v35_v9 }
  0xe3   :  { %v121_v14 = vpop.f32.mrf.mxu0 }
  0xe4   :  { %v122_v16 = vadd.f32 %v224_v13, %v121_v14 }
  0xe5   :  { %v260_v15 = vpop.f32.mrf.mxu0 }
  0xe6   :  { %v128_v20 = vmax.f32 %v122_v16, 0.0 }
  0xe7   :  { %v124_v17 = vpop.f32.mrf.mxu0 }
  0xe8   :  { %v125_v18 = vadd.f32 %v224_v13, %v124_v17 }
  0xe9   :  { %v261_v19 = vpop.f32.mrf.mxu0 }
  0xea   :  { %v129_v21 = vmax.f32 %v125_v18, 0.0 }
  0xec   :  { %v130_v22 = vpack.c.bf16 %v129_v21, %v128_v20 }
  0xee   :  { %271 = vmatmul.mubr.msk.bf16.vlgmr.msra.gmra.mxu1 %vm170_vm2, %v130_v22 }
 0x1ae   :  { %v208_v24 = vpop.f32.mrf.mxu1 }
 0x1af   :  { %v209_v25 = vadd.f32 %v231_v23, %v208_v24 }
 0x1b0   :  { %v272_v26 = vpop.f32.mrf.mxu1 }
 0x1b1   :  { %216 = vst.msk [vmem:[%s391_s5] sm:$0xff] %vm215_vm3, %v209_v25 }
 0x1b2   :  { %v211_v27 = vpop.f32.mrf.mxu1 }
 0x1b3   :  { %v212_v28 = vadd.f32 %v231_v23, %v211_v27 }
 0x1b4   :  { %v273_v29 = vpop.f32.mrf.mxu1 }
 0x1b5   :  { %218 = vst.msk [vmem:[%s391_s5 + $0x8] sm:$0x3] %vm217_vm4, %v212_v28 }
 0x1b6   :  { %223 = vsyncpa [#allocation3], 1 }

// kernel: _lambda_.5
= control target key start
LH: loop header
LB: loop body
LE: loop exit
PB: predicated region body
PF: predicated region fallthrough
CT: control target
= control target key end

     0   :  { %v264_v0 = vmov 0.0   ;;  %vm265_vm0 = vmmov 0   ;;  %vm45_vm1 = vcmask 261120   ;;  %v266_v6 = vmov 0   ;;  %s351_s2 = inlined_call_operand.vmem [shape: bf16[32,32], index: 2, kind: input, shape index: {}]   ;;  %s352_s0 = inlined_call_operand.vmem [shape: f32[16,32], index: 0, kind: input, shape index: {}]   ;;  %s353_s1 = inlined_call_operand.vmem [shape: bf16[16,16], index: 1, kind: input, shape index: {}]   ;;  %s354_s4 = inlined_call_operand.vmem [shape: f32[16,1], index: 4, kind: input, shape index: {}]   ;;  %s355_s3 = inlined_call_operand.vmem [shape: f32[1,32], index: 3, kind: input, shape index: {}]   ;;  %s356_s6 = inlined_call_operand.vmem [shape: f32[16,32], index: 6, kind: output, shape index: {0}]   ;;  %s357_s5 = inlined_call_operand.vmem [shape: bf16[4,16], index: 5, kind: input, shape index: {}]   ;;  %s358_s7 = inlined_call_operand.vmem [shape: f32[4,32], index: 7, kind: output, shape index: {1}]  }
   0x1   :  { %237 = vmatprep.subr.bf16.mxu0 %v264_v0  ;;  %v261_v1 = vld [vmem:[%s351_s2 + $0x8] sm:$0xff]   ;;  %241 = vmatprep.mubr.msk.bf16.mxu0 %vm265_vm0, %v264_v0  ;;  %v262_v2 = vld [vmem:[%s351_s2] sm:$0xff]   ;;  %vm105_vm4 = vcmask 130048   ;;  %vm213_vm7 = vcmask 257024  }
   0x2   :  { %245 = vmatprep.subr.bf16.mxu1 %v264_v0  ;;  %247 = vmatprep.mubr.msk.bf16.mxu1 %vm265_vm0, %v264_v0  ;;  %v26_v3 = vld [vmem:[%s352_s0] sm:$0xff]  ;;  %v27_v4 = vld [vmem:[%s352_s0 + $0x8] sm:$0xff] }
   0x3   :  { %238 = vmatpush3.bf16.msra.mxu0 %v261_v1  ;;  %v28_v5 = vpack.c.bf16 %v27_v4, %v26_v3  ;;  %260 = vset.pattern.permute.xlu0 %v266_v6  ;;  %v150_v7 = vld [vmem:[%s354_s4] sm:$0xff]  ;;  %v151_v8 = vld [vmem:[%s354_s4 + $0x8] sm:$0xff] }
   0x4   :  { %239 = vmatprep.subr.bf16.mxu0 %v264_v0  ;;  %vm152_vm2 = vcmp.gt.f32.partialorder %v150_v7, 0.0  ;;  %vm153_vm3 = vcmp.gt.f32.partialorder %v151_v8, 0.0  ;;  %v263_v16 = vld [vmem:[%s353_s1] sm:$0xff]  }
   0x5   :  { %v154_v9 = vsel %vm152_vm2, 1, %v266_v6  ;;  %v155_v10 = vsel %vm153_vm3, 1, %v266_v6  ;;  %v226_v18 = vld [vmem:[%s355_s3] ss:$0 sm:$0xff] }
   0x6   :  { %157 = vperm.xlu0 %260, %v154_v9   ;;  %v168_v29 = vld [vmem:[%s357_s5] sm:$0x3] }
   0x7   :  { %240 = vmatpush3.bf16.msra.mxu0 %v262_v2 }
   0xa   :  { %242 = vmatmul.mubr.msk.bf16.vlgmr.msra.gmra.mxu0 %vm45_vm1, %v28_v5  ;;  %160 = vperm.xlu0 %260, %v155_v10  }
  0x81   :  { %v158_v17 = vpop.permute.xlu0 %157 }
  0x82   :  { %vm162_vm5 = vcmp.eq.s32.totalorder %v158_v17, 1 }
  0x85   :  { %v161_v23 = vpop.permute.xlu0 %160 }
  0x86   :  { %vm163_vm6 = vcmp.eq.s32.totalorder %v161_v23, 1 }
  0xca   :  { %v83_v11 = vpop.f32.mrf.mxu0 }
  0xcc   :  { %v243_v12 = vpop.f32.mrf.mxu0 }
  0xce   :  { %v86_v13 = vpop.f32.mrf.mxu0 }
  0xcf   :  { %v92_v14 = vpack.c.bf16 %v86_v13, %v83_v11 }
  0xd0   :  { %v244_v15 = vpop.f32.mrf.mxu0 }
  0xd1   :  { %246 = vmatpush3.bf16.msra.mxu1 %v92_v14 }
  0xd2   :  { %251 = vmatprep.subr.bf16.mxu1 %v264_v0 }
  0xd4   :  { %248 = vmatmul.mubr.msk.bf16.vlgmr.msra.gmra.mxu1 %vm105_vm4, %v263_v16 }
  0xd5   :  { %253 = vmatprep.mubr.msk.bf16.mxu1 %vm265_vm0, %v264_v0 }
 0x194   :  { %v143_v19 = vpop.f32.mrf.mxu1 }
 0x195   :  { %v144_v20 = vadd.f32 %v226_v18, %v143_v19 }
 0x196   :  { %v249_v21 = vpop.f32.mrf.mxu1 }
 0x197   :  { %v164_v22 = vsel %vm162_vm5, %v144_v20, %v26_v3 }
 0x198   :  { %166 = vst.msk [vmem:[%s356_s6] sm:$0xff] %vm45_vm1, %v164_v22  ;;  %v146_v24 = vpop.f32.mrf.mxu1 }
 0x199   :  { %v147_v25 = vadd.f32 %v226_v18, %v146_v24 }
 0x19a   :  { %v250_v26 = vpop.f32.mrf.mxu1 }
 0x19b   :  { %v165_v27 = vsel %vm163_vm6, %v147_v25, %v27_v4 }
 0x19c   :  { %167 = vst.msk [vmem:[%s356_s6 + $0x8] sm:$0xff] %vm45_vm1, %v165_v27  ;;  %v169_v28 = vpack.c.bf16 %v165_v27, %v164_v22 }
 0x19e   :  { %252 = vmatpush3.bf16.msra.mxu1 %v169_v28 }
 0x1a1   :  { %254 = vmatmul.mubr.msk.bf16.vlgmr.msra.gmra.mxu1 %vm105_vm4, %v168_v29 }
 0x261   :  { %v207_v30 = vpop.f32.mrf.mxu1 }
 0x262   :  { %214 = vst.msk [vmem:[%s358_s7] sm:$0xf] %vm213_vm7, %v207_v30 }
 0x263   :  { %v255_v31 = vpop.f32.mrf.mxu1 }
 0x265   :  { %v210_v32 = vpop.f32.mrf.mxu1 }
 0x267   :  { %v256_v33 = vpop.f32.mrf.mxu1 }

// kernel: _lambda_.6
= control target key start
LH: loop header
LB: loop body
LE: loop exit
PB: predicated region body
PF: predicated region fallthrough
CT: control target
= control target key end

     0   :  { %v703_v1 = vmov 0   ;;  %vm89_vm0 = vcmask 261120   ;;  %s704_s23 = smov 124   ;;  %v705_v11 = vmov 0.0   ;;  %vm142_vm1 = vcmask 1043456   ;;  %s887_s1 = inlined_call_operand.vmem [shape: bf16[32,136], index: 1, kind: input, shape index: {}]   ;;  %s888_s0 = inlined_call_operand.vmem [shape: f32[4,32], index: 0, kind: input, shape index: {}]   ;;  %s889_s3 = inlined_call_operand.vmem [shape: bf16[26,8], index: 3, kind: input, shape index: {}]   ;;  %s890_s5 = inlined_call_operand.vmem [shape: bf16[4,128], index: 5, kind: input, shape index: {}]   ;;  %s891_s2 = inlined_call_operand.vmem [shape: f32[26,4], index: 2, kind: input, shape index: {}]   ;;  %s892_s4 = inlined_call_operand.vmem [shape: bf16[4,26], index: 4, kind: input, shape index: {}]   ;;  %s893_s6 = inlined_call_operand.vmem [shape: bf16[128,32], index: 6, kind: input, shape index: {}]   ;;  %s894_s9 = inlined_call_operand.vmem [shape: bf16[16,4], index: 9, kind: input, shape index: {}]   ;;  %s895_s7 = inlined_call_operand.vmem [shape: f32[1,32], index: 7, kind: input, shape index: {}]   ;;  %s896_s8 = inlined_call_operand.vmem [shape: f32[16,32], index: 8, kind: input, shape index: {}]   ;;  %s897_s10 = inlined_call_operand.vmem [shape: f32[16,32], index: 10, kind: output, shape index: {}]  }
   0x1   :  { %v676_v0 = vld [vmem:[%s887_s1 + $0x14] ss:$8 sps:$4 sm:$0xff]   ;;  %125 = vmatprep.mubr.bf16.mxu0 %v703_v1  ;;  %202 = vmatprep.mubr.bf16.mxu1 %v703_v1  ;;  %v678_v2 = vld [vmem:[%s887_s1 + $0x10] ss:$8 sps:$4 sm:$0xff]   ;;  %v679_v3 = vld [vmem:[%s887_s1 + $0x4] ss:$8 sps:$4 sm:$0xff]  }
   0x2   :  { %105 = vmatprep.subr.bf16.mxu0 %v676_v0  ;;  %v681_v4 = vld [vmem:[%s887_s1] ss:$8 sps:$4 sm:$0xff]   ;;  %v138_v12 = vrot.slane %v705_v11, 4  ;;  %vm157_vm2 = vcmask 64512   ;;  %vm274_vm3 = vcmask 1041408   ;;  %v43_v32 = vld [vmem:[%s891_s2 + $0x10] sm:$0xff] }
   0x3   :  { %106 = vmatpush1.bf16.msra.mxu0 %v678_v2  ;;  %v36_v5 = vld [vmem:[%s888_s0] sm:$0xf]  ;;  %v683_v21 = vld [vmem:[%s889_s3 + $0x8] sm:$0x1f]   ;;  %v44_v38 = vld [vmem:[%s891_s2 + $0x18] sm:$0x3] }
   0x4   :  { %107 = vmatprep.subr.bf16.mxu0 %v679_v3  ;;  %v68_v6 = vpack.c.bf16 %v36_v5, %v36_v5  ;;  %v682_v20 = vld [vmem:[%s889_s3] sm:$0xff]   ;;  %v42_v27 = vld [vmem:[%s891_s2 + $0x8] sm:$0xff]  ;;  %vm239_vm7 = vcmask 31744   ;;  %vm243_vm8 = vcmask 25600   ;;  %vm337_vm10 = vcmask 1044480  }
   0x5   :  { %v50_v22 = vld [vmem:[%s890_s5] sm:$0x3]  ;;  %vm333_vm11 = vcmask 211968   ;;  %vm706_vm12 = vmmov 0  }
   0x6   :  { %v794_v23 = vsel %vm274_vm3, %v50_v22, 0  ;;  %v41_v28 = vld [vmem:[%s891_s2] sm:$0xff] }
   0x7   :  { %108 = vmatpush1.bf16.msra.mxu0 %v681_v4 }
   0x8   :  { %671 = vmatprep.subr.msk.bf16.mxu0 %vm274_vm3, %v50_v22 }
   0xa   :  { %595 = vmatmul.mubr.msk.bf16.vlgmr.msra.gmra.mxu0 %vm89_vm0, %v68_v6 }
   0xb   :  { %634 = vmatpush3.bf16.msra.mxu0 %v794_v23 }
  0xca   :  { %v127_v7 = vpop.f32.mrf.mxu0 }
  0xcb   :  { %v143_v13 = vsel %vm142_vm1, %v127_v7, %v138_v12 }
  0xcc   :  { %v129_v8 = vpop.f32.mrf.mxu0  ;;  %v145_v16 = vpack.c.bf16 %v143_v13, %v143_v13 }
  0xcd   :  { %135 = vrot.lane.b32.xlu0 %v129_v8, %s704_s23 }
  0xce   :  { %v131_v9 = vpop.f32.mrf.mxu0  ;;  %v165_v19 = vsel %vm142_vm1, %v145_v16, 0 }
  0xd0   :  { %v132_v10 = vpop.f32.mrf.mxu0 }
 0x13f   :  { %v136_v14 = vpop.permute.xlu0 %135 }
 0x140   :  { %v139_v15 = vrot.slane %v136_v14, 4 }
 0x142   :  { %v144_v17 = vsel %vm142_vm1, %v129_v8, %v139_v15 }
 0x143   :  { %v146_v18 = vpack.c.bf16 %v144_v17, %v144_v17 }
 0x145   :  { %598 = vmatprep.subr.msk.bf16.mxu1 %vm142_vm1, %v146_v18 }
 0x146   :  { %185 = vmatpush1.bf16.msra.mxu1 %v165_v19 }
 0x147   :  { %645 = vmatprep.subr.bf16.mxu1 %v705_v11 }
 0x149   :  { %599 = vmatmul.mubr.msk.bf16.vlgmr.msra.gmra.mxu1 %vm157_vm2, %v682_v20 }
 0x14a   :  { %212 = vmatprep.mubr.bf16.mxu1 %v703_v1 }
 0x151   :  { %600 = vmatmul.mubr.msk.bf16.gmra.mxu1 %vm157_vm2, %v683_v21 }
 0x152   :  { %661 = vmatprep.mubr.msk.bf16.mxu1 %vm706_vm12, %v705_v11 }
 0x209   :  { %v797_v24 = vpop.f32.mrf.mxu1 }
 0x20b   :  { %v206_v25 = vpop.f32.mrf.mxu1 }
 0x20c   :  { %v223_v33 = vadd.f32 %v206_v25, %v41_v28  ;;  %v688_v28 = vld [vmem:[%s893_s6 + $0x18] sm:$0xff]  }
 0x20d   :  { %v799_v26 = vpop.f32.mrf.mxu1 }
 0x20e   :  { %v231_v39 = vmul.f32 0.2, %v223_v33  ;;  %vm227_vm5 = vcmp.gt.f32.partialorder %v223_v33, 0.0 }
 0x20f   :  { %v210_v29 = vpop.f32.mrf.mxu1 }
 0x210   :  { %v224_v30 = vadd.f32 %v210_v29, %v42_v27  ;;  %v235_v44 = vsel %vm227_vm5, %v223_v33, %v231_v39  ;;  %v687_v27 = vld [vmem:[%s893_s6 + $0x20] sm:$0xff]   ;;  %v689_v29 = vld [vmem:[%s893_s6 + $0x10] sm:$0xff]  }
 0x211   :  { %v214_v31 = vpop.f32.mrf.mxu1  ;;  %v240_v49 = vsel %vm239_vm7, %v235_v44, -inf }
 0x212   :  { %v232_v35 = vmul.f32 0.2, %v224_v30  ;;  %vm228_vm4 = vcmp.gt.f32.partialorder %v224_v30, 0.0 }
 0x213   :  { %v216_v34 = vpop.f32.mrf.mxu1 }
 0x214   :  { %v225_v36 = vadd.f32 %v216_v34, %v43_v32  ;;  %v236_v42 = vsel %vm228_vm4, %v224_v30, %v232_v35  ;;  %v690_v30 = vld [vmem:[%s893_s6 + $0x8] sm:$0xff]  }
 0x215   :  { %v218_v37 = vpop.f32.mrf.mxu1  ;;  %v241_v47 = vsel %vm239_vm7, %v236_v42, -inf }
 0x216   :  { %v233_v40 = vmul.f32 0.2, %v225_v36  ;;  %vm229_vm6 = vcmp.gt.f32.partialorder %v225_v36, 0.0  ;;  %v245_v52 = vmax.f32 %v240_v49, %v241_v47 }
 0x217   :  { %v220_v41 = vpop.f32.mrf.mxu1 }
 0x218   :  { %v226_v43 = vadd.f32 %v220_v41, %v44_v38  ;;  %v237_v45 = vsel %vm229_vm6, %v225_v36, %v233_v40  ;;  %v691_v38 = vld [vmem:[%s893_s6] sm:$0xff]  }
 0x219   :  { %v242_v50 = vsel %vm239_vm7, %v237_v45, -inf }
 0x21a   :  { %vm230_vm9 = vcmp.gt.f32.partialorder %v226_v43, 0.0  ;;  %v234_v46 = vmul.f32 0.2, %v226_v43 }
 0x21c   :  { %v238_v48 = vsel %vm230_vm9, %v226_v43, %v234_v46 }
 0x21d   :  { %v244_v51 = vsel %vm243_vm8, %v238_v48, -inf }
 0x21e   :  { %v246_v53 = vmax.f32 %v242_v50, %v244_v51  ;;  %v692_v51 = vld [vmem:[%s894_s9] sm:$0xff]  }
 0x220   :  { %v247_v54 = vmax.f32 %v245_v52, %v246_v53  ;;  %v526_v53 = vld [vmem:[%s896_s8] sm:$0xff] }
 0x222   :  { %v248_v55 = vrot.slane %v247_v54, 4 }
 0x224   :  { %v249_v56 = vmax.f32 %v247_v54, %v248_v55 }
 0x226   :  { %v250_v57 = vrot.slane %v249_v56, 2 }
 0x228   :  { %v251_v58 = vmax.f32 %v249_v56, %v250_v57  ;;  %v527_v57 = vld [vmem:[%s896_s8 + $0x8] sm:$0xff] }
 0x22a   :  { %v252_v59 = vrot.slane %v251_v58, 1 }
 0x22c   :  { %v253_v60 = vmax.f32 %v251_v58, %v252_v59 }
 0x22e   :  { %v254_v61 = vsub.f32 %v235_v44, %v253_v60  ;;  %v255_v62 = vsub.f32 %v236_v42, %v253_v60  ;;  %v256_v63 = vsub.f32 %v237_v45, %v253_v60  ;;  %v257_v0 = vsub.f32 %v238_v48, %v253_v60  ;;  %v606_v45 = vld [vmem:[%s895_s7] ss:$0 sm:$0xff] }
 0x230   :  { %v264_v2 = vmul.f32 1.442695, %v257_v0  ;;  %v258_v3 = vmul.f32 1.442695, %v254_v61  ;;  %v260_v4 = vmul.f32 1.442695, %v255_v62 }
 0x231   :  { %v262_v5 = vmul.f32 1.442695, %v256_v63 }
 0x232   :  { %693 = vpow2.f32 %v264_v2 }
 0x233   :  { %695 = vpow2.f32 %v258_v3 }
 0x234   :  { %697 = vpow2.f32 %v260_v4 }
 0x235   :  { %699 = vpow2.f32 %v262_v5 }
 0x23f   :  { %v694_v6 = vpop.eup %693 }
 0x240   :  { %v696_v7 = vpop.eup %695 }
 0x241   :  { %v698_v8 = vpop.eup %697 }
 0x242   :  { %v700_v9 = vpop.eup %699  ;;  %v266_v10 = vpack.c.bf16 %v698_v8, %v696_v7 }
 0x243   :  { %v267_v12 = vpack.c.bf16 %v694_v6, %v700_v9 }
 0x244   :  { %635 = vmatprep.mubr.msk.bf16.mxu0 %vm239_vm7, %v266_v10 }
 0x245   :  { %603 = vmatprep.subr.msk.bf16.mxu0 %vm337_vm10, %v267_v12  ;;  %636 = vmatmul.mubr.msk.bf16.vlgmr.msra.gmra.mxu0 %vm239_vm7, %v267_v12 }
 0x246   :  { %375 = vmatprep.mubr.bf16.mxu0 %v703_v1  ;;  %v49_v1 = vld [vmem:[%s892_s4] sm:$0x3] }
 0x305   :  { %v637_v13 = vpop.f32.mrf.mxu0 }
 0x306   :  { %v329_v16 = vmul.f32 %v637_v13, %v214_v31 }
 0x307   :  { %v312_v14 = vpop.f32.mrf.mxu0 }
 0x308   :  { %v327_v22 = vmul.f32 %v312_v14, %v797_v24  ;;  %v684_v24 = vld [vmem:[%s893_s6 + $0x38] sm:$0xff]  }
 0x309   :  { %v638_v15 = vpop.f32.mrf.mxu0  ;;  %646 = vmatpush3.bf16.msra.mxu1 %v684_v24 }
 0x30a   :  { %v330_v17 = vmul.f32 %v638_v15, %v218_v37  ;;  %647 = vmatprep.subr.bf16.mxu1 %v705_v11 }
 0x30b   :  { %v315_v18 = vpop.f32.mrf.mxu0 }
 0x30c   :  { %v332_v19 = vpack.c.bf16 %v330_v17, %v329_v16  ;;  %v328_v20 = vmul.f32 %v315_v18, %v799_v26  ;;  %v685_v26 = vld [vmem:[%s893_s6 + $0x30] sm:$0xff]  }
 0x30d   :  { %648 = vmatpush3.bf16.msra.mxu1 %v685_v26 }
 0x30e   :  { %v339_v21 = vsel %vm337_vm10, %v332_v19, 0  ;;  %v331_v25 = vpack.c.bf16 %v328_v20, %v327_v22  ;;  %649 = vmatprep.subr.bf16.mxu1 %v705_v11 }
 0x30f   :  { %356 = vmatpush1.bf16.msra.mxu0 %v339_v21 }
 0x310   :  { %357 = vmatprep.subr.bf16.mxu0 %v266_v10 }
 0x313   :  { %358 = vmatpush1.bf16.msra.mxu0 %v331_v25 }
 0x314   :  { %639 = vmatprep.subr.bf16.mxu0 %v705_v11 }
 0x316   :  { %604 = vmatmul.mubr.msk.bf16.vlgmr.msra.gmra.mxu0 %vm333_vm11, %v49_v1 }
 0x317   :  { %640 = vmatpush3.bf16.msra.mxu0 %v794_v23  ;;  %641 = vmatprep.mubr.msk.bf16.mxu0 %vm706_vm12, %v705_v11  ;;  %v686_v23 = vld [vmem:[%s893_s6 + $0x28] sm:$0xff]  }
 0x318   :  { %665 = vmatprep.subr.bf16.mxu0 %v705_v11  ;;  %650 = vmatpush3.bf16.msra.mxu1 %v686_v23 }
 0x319   :  { %651 = vmatprep.subr.bf16.mxu1 %v705_v11 }
 0x31c   :  { %652 = vmatpush3.bf16.msra.mxu1 %v687_v27 }
 0x31d   :  { %653 = vmatprep.subr.bf16.mxu1 %v705_v11 }
 0x320   :  { %654 = vmatpush3.bf16.msra.mxu1 %v688_v28 }
 0x321   :  { %655 = vmatprep.subr.bf16.mxu1 %v705_v11 }
 0x324   :  { %656 = vmatpush3.bf16.msra.mxu1 %v689_v29 }
 0x325   :  { %657 = vmatprep.subr.bf16.mxu1 %v705_v11 }
 0x328   :  { %658 = vmatpush3.bf16.msra.mxu1 %v690_v30 }
 0x329   :  { %659 = vmatprep.subr.bf16.mxu1 %v705_v11 }
 0x32c   :  { %660 = vmatpush3.bf16.msra.mxu1 %v691_v38 }
 0x3d6   :  { %v377_v31 = vpop.f32.mrf.mxu0 }
 0x3d8   :  { %v379_v32 = vpop.f32.mrf.mxu0 }
 0x3d9   :  { %v384_v33 = vadd.f32 1e-20, %v379_v32 }
 0x3da   :  { %v381_v34 = vpop.f32.mrf.mxu0 }
 0x3db   :  { %701 = vrcp.f32 %v384_v33 }
 0x3dc   :  { %v382_v35 = vpop.f32.mrf.mxu0 }
 0x3e8   :  { %v702_v36 = vpop.eup %701 }
 0x3e9   :  { %v386_v37 = vpack.c.bf16 %v702_v36, %v702_v36 }
 0x3eb   :  { %642 = vmatmul.mubr.msk.bf16.vlgmr.msra.gmra.mxu0 %vm239_vm7, %v386_v37 }
 0x3ec   :  { %667 = vmatprep.mubr.msk.bf16.mxu0 %vm706_vm12, %v705_v11 }
 0x4ab   :  { %v424_v39 = vpop.f32.mrf.mxu0 }
 0x4ac   :  { %v430_v40 = vmul.f32 %v424_v39, %v377_v31 }
 0x4ad   :  { %v643_v41 = vpop.f32.mrf.mxu0 }
 0x4ae   :  { %v431_v42 = vpack.c.bf16 %v430_v40, %v430_v40 }
 0x4af   :  { %v427_v43 = vpop.f32.mrf.mxu0 }
 0x4b0   :  { %662 = vmatmul.mubr.bf16.vlgmr.msra.gmra.mxu1 %v431_v42 }
 0x4b1   :  { %v644_v44 = vpop.f32.mrf.mxu0 }
 0x570   :  { %v520_v46 = vpop.f32.mrf.mxu1 }
 0x571   :  { %v521_v47 = vadd.f32 %v606_v45, %v520_v46 }
 0x572   :  { %v663_v48 = vpop.f32.mrf.mxu1 }
 0x573   :  { %v530_v11 = vpack.c.bf16 %v521_v47, %v521_v47 }
 0x574   :  { %v523_v49 = vpop.f32.mrf.mxu1 }
 0x575   :  { %v540_v50 = vsel %vm274_vm3, %v530_v11, 0 }
 0x576   :  { %v664_v52 = vpop.f32.mrf.mxu1  ;;  %666 = vmatpush3.bf16.msra.mxu0 %v540_v50 }
 0x579   :  { %668 = vmatmul.mubr.msk.bf16.vlgmr.msra.gmra.mxu0 %vm239_vm7, %v692_v51 }
 0x639   :  { %v576_v54 = vpop.f32.mrf.mxu0 }
 0x63a   :  { %v583_v55 = vadd.f32 %v576_v54, %v526_v53 }
 0x63b   :  { %v669_v56 = vpop.f32.mrf.mxu0 }
 0x63c   :  { %585 = vst.msk [vmem:[%s897_s10] sm:$0xff] %vm89_vm0, %v583_v55 }
 0x63d   :  { %v579_v58 = vpop.f32.mrf.mxu0 }
 0x63e   :  { %v584_v59 = vadd.f32 %v579_v58, %v527_v57 }
 0x63f   :  { %v670_v60 = vpop.f32.mrf.mxu0 }
 0x640   :  { %586 = vst.msk [vmem:[%s897_s10 + $0x8] sm:$0xff] %vm89_vm0, %v584_v59 }

// kernel: _lambda_.7
= control target key start
LH: loop header
LB: loop body
LE: loop exit
PB: predicated region body
PF: predicated region fallthrough
CT: control target
= control target key end

     0   :  { %s1426_s17 = smov 0   ;;  %s1613_s0 = inlined_call_operand.vmem [shape: f32[16,32], index: 0, kind: input, shape index: {}, may-alias: {0,11}]   ;;  %s1614_s1 = inlined_call_operand.vmem [shape: bf16[2,32,136], index: 1, kind: input, shape index: {}]   ;;  %s1615_s2 = inlined_call_operand.vmem [shape: f32[2,52,4], index: 2, kind: input, shape index: {}]   ;;  %s1616_s3 = inlined_call_operand.vmem [shape: bf16[52,32], index: 3, kind: input, shape index: {}]   ;;  %s1617_s4 = inlined_call_operand.vmem [shape: bf16[16,52], index: 4, kind: input, shape index: {}]   ;;  %s1618_s5 = inlined_call_operand.vmem [shape: bf16[4,128], index: 5, kind: input, shape index: {}]   ;;  %s1619_s6 = inlined_call_operand.vmem [shape: bf16[128,32], index: 6, kind: input, shape index: {}]   ;;  %s1620_s7 = inlined_call_operand.vmem [shape: f32[2,1,32], index: 7, kind: input, shape index: {}]   ;;  %s1621_s8 = inlined_call_operand.vmem [shape: f32[2,1,32], index: 8, kind: input, shape index: {}, may-alias: {8,10}]   ;;  %s1622_s9 = inlined_call_operand.vmem [shape: f32[2,1,32], index: 9, kind: input, shape index: {}]   ;;  %s1623_s10 = inlined_call_operand.vmem [shape: f32[2,1,32], index: 10, kind: input, shape index: {}, may-alias: {8,10}]   ;;  %s1624_s11 = inlined_call_operand.vmem [shape: f32[16,32], index: 11, kind: output, shape index: {}, may-alias: {0,11}]  }
   0x1   :  { %1627 = sst [smem:[#allocation4_spill]] %s1624_s11 }
   0x2 LB: > { %1628 = sst [smem:[#allocation3_spill]] %s1359_s17  ;;  %s1193_s18 = sadd.s32 4294967295, %s1359_s17   ;;  %s1359_s17 = sphi %s1426_s17, %s21_s17  }
   0x3   : > { %p1196_p0 = scmp.ge.s32.totalorder %s1359_s17, 1  ;;  %p374_p1 = scmp.lt.s32.totalorder %s1359_s17, 3 }
   0x5   : > { %p375_p2 = pnand %p1196_p0, %p374_p1 }
   0x6   : > { %p426_p3 = scmp.lt.s32.totalorder (!%p375_p2), %s1193_s18, 1  ;;  %p1200_p4 = scmp.ne.s32.totalorder (!%p375_p2), %s1193_s18, 0 }
   0x7   : > { %378 = sbr.rel (%p375_p2) target bundleno = 1549 (0x60d), region = 64 }
   0xc   : > { %s1434_s19 = scalar_select %p426_p3, %s1193_s18, 1 }
   0xd   : > { %452 = sbr.rel (%p1200_p4) target bundleno = 20 (0x14), region = 68 }
   0xe   : > { %s1237_s20 = sshll.u32 %s1434_s19, 5  ;;  %s1291_s21 = smul.u32 56, %s1434_s19 }
   0xf   : > { %s430_s24 = scalar_lea.vmem %s1614_s1, %s1237_s20  ;;  %s438_s27 = scalar_lea.vmem %s1620_s7, %s1434_s19 }
  0x10   : > { %s1448_s30 = scalar_lea.vmem %s1615_s2, %s1291_s21  ;;  %s441_s14 = scalar_lea.vmem %s1621_s8, %s1434_s19 }
  0x11   : > { %s444_s17 = scalar_lea.vmem %s1622_s9, %s1434_s19  ;;  %s447_s20 = scalar_lea.vmem %s1623_s10, %s1434_s19 }
  0x12   : > { %v453_v0 = vld [vmem:[%s1613_s0] sm:$0xff]  ;;  %vm455_vm0 = vcmask 261120   ;;  %v454_v1 = vld [vmem:[%s1613_s0 + $0x8] sm:$0xff] }
  0x13   : > { %456 = vst.msk [vmem:[#allocation2] sm:$0xff] %vm455_vm0, %v453_v0  ;;  %457 = vst.msk [vmem:[#allocation2 + $0x8] sm:$0xff] %vm455_vm0, %v454_v1 }
  0x14 PF: > { %v1310_v2 = vld [vmem:[%s430_s24 + $0x14] ss:$8 sps:$4 sm:$0xff]   ;;  %v1312_v3 = vld [vmem:[%s430_s24 + $0x10] ss:$8 sps:$4 sm:$0xff]   ;;  %v1361_v4 = vmov 0   ;;  %vm519_vm1 = vcmask 261120  }
  0x15   : > { %555 = vmatprep.mubr.bf16.mxu0 %v1361_v4  ;;  %640 = vmatprep.mubr.bf16.mxu1 %v1361_v4  ;;  %v1313_v5 = vld [vmem:[%s430_s24 + $0x4] ss:$8 sps:$4 sm:$0xff]   ;;  %v1315_v6 = vld [vmem:[%s430_s24] ss:$8 sps:$4 sm:$0xff]   ;;  %s1362_s11 = smov 124   ;;  %v1363_v21 = vmov 0.0|0.0  }
  0x16   : > { %535 = vmatprep.subr.bf16.mxu0 %v1310_v2  ;;  %v1316_v22 = vld [vmem:[%s1616_s3] sm:$0xff]   ;;  %v1317_v23 = vld [vmem:[%s1616_s3 + $0x8] sm:$0xff]   ;;  %v1318_v24 = vld [vmem:[%s1616_s3 + $0x10] sm:$0xff]   ;;  %vm765_vm2 = vcmask 1041408   ;;  %vm707_vm7 = vcmask 31744   ;;  %vm716_vm10 = vcmask 27648  }
  0x17   : > { %536 = vmatpush1.bf16.msra.mxu0 %v1312_v3  ;;  %v1319_v25 = vld [vmem:[%s1616_s3 + $0x18] ss:$0 sps:$4 sm:$0x33]   ;;  %v480_v26 = vld [vmem:[%s1618_s5] sm:$0x3]  ;;  %v465_v36 = vld [vmem:[%s1448_s30 + $0x8] sm:$0xff] }
  0x18   : > { %537 = vmatprep.subr.bf16.mxu0 %v1313_v5  ;;  %v1501_v27 = vsel %vm765_vm2, %v480_v26, 0  ;;  %v468_v38 = vld [vmem:[%s1448_s30 + $0x20] sm:$0xff]  ;;  %v466_v41 = vld [vmem:[%s1448_s30 + $0x10] sm:$0xff]  ;;  %v467_v45 = vld [vmem:[%s1448_s30 + $0x18] sm:$0xff]  ;;  %vm849_vm12 = vcmask 424960   ;;  %vm1365_vm13 = vmmov 0  }
  0x19   : > { %v464_v39 = vld [vmem:[%s1448_s30] sm:$0xff]  ;;  %v469_v47 = vld [vmem:[%s1448_s30 + $0x28] sm:$0xff]  ;;  %v470_v56 = vld [vmem:[%s1448_s30 + $0x30] sm:$0xf] }
  0x1a   : > { %v1470_v7 = vld [vmem:[#allocation2] sm:$0xff]  ;;  %v1472_v8 = vld [vmem:[#allocation2 + $0x8] sm:$0xff] }
  0x1b   : > { %v498_v9 = vpack.c.bf16 %v1472_v8, %v1470_v7  ;;  %538 = vmatpush1.bf16.msra.mxu0 %v1315_v6 }
  0x1c   : > { %1290 = vmatprep.subr.msk.bf16.mxu0 %vm765_vm2, %v480_v26 }
  0x1e   : > { %1205 = vmatmul.mubr.msk.bf16.vlgmr.msra.gmra.mxu0 %vm519_vm1, %v498_v9 }
  0x1f   : > { %1255 = vmatpush3.bf16.msra.mxu0 %v1501_v27 }
  0xde   : > { %v557_v10 = vpop.f32.mrf.mxu0 }
  0xe0   : > { %v559_v11 = vpop.f32.mrf.mxu0 }
  0xe2   : > { %v561_v12 = vpop.f32.mrf.mxu0 }
  0xe3   : > { %v574_v13 = vpack.c.bf16 %v561_v12, %v557_v10 }
  0xe4   : > { %v563_v14 = vpop.f32.mrf.mxu0 }
  0xe5   : > { %v1305_v15 = vpack.i.bf16 %v563_v14, %v559_v11  ;;  %v575_v20 = vpack.c.bf16 %v563_v14, %v559_v11 }
  0xe7   : > { %1306 = vrot.lane.b32.xlu0 %v1305_v15, %s1362_s11 }
 0x159   : > { %v1307_v16 = vpop.permute.xlu0 %1306 }
 0x15a   : > { %v1309_v17 = vunpack.i.h.bf16 %v1307_v16  ;;  %v1308_v18 = vunpack.i.l.bf16 %v1307_v16 }
 0x15c   : > { %v577_v19 = vpack.c.bf16 %v1309_v17, %v1308_v18 }
 0x15e   : > { %620 = vmatprep.subr.bf16.mxu1 %v577_v19 }
 0x15f   : > { %621 = vmatpush1.bf16.msra.mxu1 %v1363_v21 }
 0x160   : > { %622 = vmatprep.subr.bf16.mxu1 %v575_v20 }
 0x163   : > { %623 = vmatpush1.bf16.msra.mxu1 %v574_v13 }
 0x166   : > { %1210 = vmatmul.mubr.msk.bf16.vlgmr.msra.gmra.mxu1 %vm519_vm1, %v1316_v22 }
 0x167   : > { %650 = vmatprep.mubr.bf16.mxu1 %v1361_v4 }
 0x16e   : > { %1211 = vmatmul.mubr.msk.bf16.gmra.mxu1 %vm519_vm1, %v1317_v23 }
 0x16f   : > { %660 = vmatprep.mubr.bf16.mxu1 %v1361_v4 }
 0x176   : > { %1212 = vmatmul.mubr.msk.bf16.gmra.mxu1 %vm519_vm1, %v1318_v24 }
 0x177   : > { %670 = vmatprep.mubr.bf16.mxu1 %v1361_v4 }
 0x17e   : > { %1213 = vmatmul.mubr.msk.bf16.gmra.mxu1 %vm519_vm1, %v1319_v25 }
 0x226   : > { %v1504_v28 = vpop.f32.mrf.mxu1 }
 0x228   : > { %v644_v29 = vpop.f32.mrf.mxu1 }
 0x229   : > { %v679_v44 = vadd.f32 %v644_v29, %v464_v39 }
 0x22a   : > { %v1506_v30 = vpop.f32.mrf.mxu1 }
 0x22b   : > { %v693_v54 = vmul.f32 0.2, %v679_v44  ;;  %vm686_vm6 = vcmp.gt.f32.partialorder %v679_v44, 0.0 }
 0x22c   : > { %v648_v31 = vpop.f32.mrf.mxu1 }
 0x22d   : > { %v680_v40 = vadd.f32 %v648_v31, %v465_v36  ;;  %v700_v3 = vsel %vm686_vm6, %v679_v44, %v693_v54 }
 0x22e   : > { %v1508_v32 = vpop.f32.mrf.mxu1  ;;  %v708_v15 = vsel %vm707_vm7, %v700_v3, -inf }
 0x22f   : > { %v694_v49 = vmul.f32 0.2, %v680_v40  ;;  %vm687_vm3 = vcmp.gt.f32.partialorder %v680_v40, 0.0 }
 0x230   : > { %v654_v33 = vpop.f32.mrf.mxu1 }
 0x231   : > { %v681_v48 = vadd.f32 %v654_v33, %v466_v41  ;;  %v701_v59 = vsel %vm687_vm3, %v680_v40, %v694_v49 }
 0x232   : > { %v1510_v34 = vpop.f32.mrf.mxu1  ;;  %v709_v9 = vsel %vm707_vm7, %v701_v59, -inf }
 0x233   : > { %v695_v57 = vmul.f32 0.2, %v681_v48  ;;  %vm688_vm8 = vcmp.gt.f32.partialorder %v681_v48, 0.0 }
 0x234   : > { %v658_v35 = vpop.f32.mrf.mxu1 }
 0x235   : > { %v682_v51 = vadd.f32 %v658_v35, %v467_v45  ;;  %v702_v5 = vsel %vm688_vm8, %v681_v48, %v695_v57 }
 0x236   : > { %v1513_v37 = vpop.f32.mrf.mxu1  ;;  %v710_v16 = vsel %vm707_vm7, %v702_v5, -inf }
 0x237   : > { %v696_v61 = vmul.f32 0.2, %v682_v51  ;;  %vm689_vm9 = vcmp.gt.f32.partialorder %v682_v51, 0.0 }
 0x238   : > { %v664_v42 = vpop.f32.mrf.mxu1 }
 0x239   : > { %v683_v43 = vadd.f32 %v664_v42, %v468_v38  ;;  %v703_v12 = vsel %vm689_vm9, %v682_v51, %v696_v61 }
 0x23a   : > { %v1519_v46 = vpop.f32.mrf.mxu1  ;;  %v711_v20 = vsel %vm707_vm7, %v703_v12, -inf }
 0x23b   : > { %v697_v52 = vmul.f32 0.2, %v683_v43  ;;  %vm690_vm4 = vcmp.gt.f32.partialorder %v683_v43, 0.0 }
 0x23c   : > { %v668_v50 = vpop.f32.mrf.mxu1 }
 0x23d   : > { %v684_v53 = vadd.f32 %v668_v50, %v469_v47  ;;  %v704_v62 = vsel %vm690_vm4, %v683_v43, %v697_v52 }
 0x23e   : > { %v1522_v55 = vpop.f32.mrf.mxu1  ;;  %v712_v10 = vsel %vm707_vm7, %v704_v62, -inf }
 0x23f   : > { %vm691_vm5 = vcmp.gt.f32.partialorder %v684_v53, 0.0  ;;  %v698_v58 = vmul.f32 0.2, %v684_v53  ;;  %v713_v18 = vmax.f32 %v708_v15, %v712_v10 }
 0x240   : > { %v674_v60 = vpop.f32.mrf.mxu1 }
 0x241   : > { %v705_v63 = vsel %vm691_vm5, %v684_v53, %v698_v58  ;;  %v685_v0 = vadd.f32 %v674_v60, %v470_v56 }
 0x242   : > { %v714_v1 = vsel %vm707_vm7, %v705_v63, -inf  ;;  %v676_v2 = vpop.f32.mrf.mxu1 }
 0x243   : > { %vm692_vm11 = vcmp.gt.f32.partialorder %v685_v0, 0.0  ;;  %v699_v6 = vmul.f32 0.2, %v685_v0  ;;  %v715_v13 = vmax.f32 %v709_v9, %v714_v1 }
 0x244   : > { %v677_v11 = vpop.f32.mrf.mxu1 }
 0x245   : > { %v706_v14 = vsel %vm692_vm11, %v685_v0, %v699_v6  ;;  %v719_v21 = vmax.f32 %v713_v18, %v715_v13 }
 0x246   : > { %v717_v17 = vsel %vm716_vm10, %v706_v14, -inf }
 0x247   : > { %v718_v19 = vmax.f32 %v710_v16, %v717_v17 }
 0x249   : > { %v720_v22 = vmax.f32 %v718_v19, %v711_v20  ;;  %v1326_v20 = vld [vmem:[%s1619_s6 + $0x10] sm:$0xff]  }
 0x24b   : > { %v721_v23 = vmax.f32 %v719_v21, %v720_v22 }
 0x24d   : > { %v722_v24 = vrot.slane %v721_v23, 4 }
 0x24f   : > { %v723_v25 = vmax.f32 %v721_v23, %v722_v24 }
 0x251   : > { %v724_v26 = vrot.slane %v723_v25, 2 }
 0x253   : > { %v725_v29 = vmax.f32 %v723_v25, %v724_v26 }
 0x255   : > { %v726_v31 = vrot.slane %v725_v29, 1 }
 0x257   : > { %v727_v33 = vmax.f32 %v725_v29, %v726_v31 }
 0x259   : > { %v734_v35 = vsub.f32 %v706_v14, %v727_v33  ;;  %v728_v36 = vsub.f32 %v700_v3, %v727_v33  ;;  %v729_v38 = vsub.f32 %v701_v59, %v727_v33  ;;  %v730_v39 = vsub.f32 %v702_v5, %v727_v33 }
 0x25a   : > { %v731_v40 = vsub.f32 %v703_v12, %v727_v33  ;;  %v732_v41 = vsub.f32 %v704_v62, %v727_v33  ;;  %v733_v45 = vsub.f32 %v705_v63, %v727_v33 }
 0x25b   : > { %v747_v42 = vmul.f32 1.442695, %v734_v35  ;;  %v735_v43 = vmul.f32 1.442695, %v728_v36  ;;  %v737_v44 = vmul.f32 1.442695, %v729_v38 }
 0x25c   : > { %v739_v47 = vmul.f32 1.442695, %v730_v39  ;;  %v741_v48 = vmul.f32 1.442695, %v731_v40  ;;  %v743_v49 = vmul.f32 1.442695, %v732_v41 }
 0x25d   : > { %1329 = vpow2.f32 %v747_v42  ;;  %v745_v50 = vmul.f32 1.442695, %v733_v45  ;;  %v1327_v35 = vld [vmem:[%s1619_s6 + $0x8] sm:$0xff]   ;;  %v1328_v36 = vld [vmem:[%s1619_s6] sm:$0xff]  }
 0x25e   : > { %1331 = vpow2.f32 %v735_v43  ;;  %v1222_v45 = vld [vmem:[%s438_s27] ss:$0 sm:$0xff] }
 0x25f   : > { %1333 = vpow2.f32 %v737_v44 }
 0x260   : > { %1335 = vpow2.f32 %v739_v47 }
 0x261   : > { %1337 = vpow2.f32 %v741_v48 }
 0x262   : > { %1339 = vpow2.f32 %v743_v49 }
 0x263   : > { %1341 = vpow2.f32 %v745_v50 }
 0x26a   : > { %v1330_v51 = vpop.eup %1329 }
 0x26b   : > { %v1332_v52 = vpop.eup %1331  ;;  %v752_v53 = vpack.c.bf16 %v1330_v51, %v1330_v51 }
 0x26c   : > { %v1334_v54 = vpop.eup %1333 }
 0x26d   : > { %v1336_v56 = vpop.eup %1335  ;;  %v749_v57 = vpack.c.bf16 %v1334_v54, %v1332_v52  ;;  %1219 = vmatprep.subr.msk.bf16.mxu0 %vm765_vm2, %v752_v53 }
 0x26e   : > { %v1338_v58 = vpop.eup %1337 }
 0x26f   : > { %v1340_v59 = vpop.eup %1339  ;;  %1256 = vmatprep.mubr.msk.bf16.mxu0 %vm707_vm7, %v749_v57  ;;  %v750_v60 = vpack.c.bf16 %v1338_v58, %v1336_v56 }
 0x270   : > { %v1342_v61 = vpop.eup %1341 }
 0x271   : > { %1257 = vmatmul.mubr.msk.bf16.vlgmr.msra.gmra.mxu0 %vm707_vm7, %v750_v60  ;;  %v751_v62 = vpack.c.bf16 %v1342_v61, %v1340_v59 }
 0x273   : > { %1260 = vmatprep.mubr.msk.bf16.mxu0 %vm707_vm7, %v751_v62 }
 0x279   : > { %1261 = vmatmul.mubr.msk.bf16.gmra.mxu0 %vm707_vm7, %v752_v53 }
 0x27a   : > { %890 = vmatprep.mubr.bf16.mxu0 %v1361_v4 }
 0x331   : > { %v1258_v63 = vpop.f32.mrf.mxu0 }
 0x332   : > { %v835_v16 = vmul.f32 %v1258_v63, %v1508_v32  ;;  %v1323_v32 = vld [vmem:[%s1619_s6 + $0x28] sm:$0xff]  }
 0x333   : > { %v803_v0 = vpop.f32.mrf.mxu0 }
 0x334   : > { %v833_v18 = vmul.f32 %v803_v0, %v1504_v28  ;;  %v1321_v28 = vld [vmem:[%s1619_s6 + $0x38] sm:$0xff]  }
 0x335   : > { %v1259_v1 = vpop.f32.mrf.mxu0 }
 0x336   : > { %v836_v4 = vmul.f32 %v1259_v1, %v1510_v34  ;;  %v1364_v34 = vmov 0.0   ;;  %v1059_v1 = vld [vmem:[%s447_s20] sm:$0x1] }
 0x337   : > { %v806_v2 = vpop.f32.mrf.mxu0  ;;  %1270 = vmatprep.subr.bf16.mxu1 %v1364_v34  ;;  %1286 = vmatprep.mubr.msk.bf16.mxu1 %vm1365_vm13, %v1364_v34 }
 0x338   : > { %v834_v17 = vmul.f32 %v806_v2, %v1506_v30  ;;  %1271 = vmatpush3.bf16.msra.mxu1 %v1321_v28  ;;  %v1322_v30 = vld [vmem:[%s1619_s6 + $0x30] sm:$0xff]   ;;  %v1231_v28 = vld [vmem:[%s441_s14] ss:$0 sm:$0xff]  ;;  %s1629_s14 = sld [smem:[#allocation4_spill]] }
 0x339   : > { %v1262_v3 = vpop.f32.mrf.mxu0  ;;  %1272 = vmatprep.subr.bf16.mxu1 %v1364_v34 }
 0x33a   : > { %v839_v5 = vmul.f32 %v1262_v3, %v1522_v55  ;;  %v841_v55 = vpack.c.bf16 %v836_v4, %v835_v16  ;;  %v840_v19 = vpack.c.bf16 %v834_v17, %v833_v18 }
 0x33b   : > { %v819_v6 = vpop.f32.mrf.mxu0 }
 0x33c   : > { %v843_v9 = vpack.c.bf16 %v839_v5, %v839_v5  ;;  %v837_v13 = vmul.f32 %v819_v6, %v1513_v37  ;;  %v1320_v37 = vld [vmem:[%s1617_s4] sm:$0xff]   ;;  %1273 = vmatpush3.bf16.msra.mxu1 %v1322_v30 }
 0x33d   : > { %v1263_v10 = vpop.f32.mrf.mxu0  ;;  %1274 = vmatprep.subr.bf16.mxu1 %v1364_v34 }
 0x33e   : > { %v854_v11 = vsel %vm765_vm2, %v843_v9, 0 }
 0x33f   : > { %v822_v12 = vpop.f32.mrf.mxu0  ;;  %867 = vmatpush1.bf16.msra.mxu0 %v854_v11 }
 0x340   : > { %v838_v14 = vmul.f32 %v822_v12, %v1519_v46  ;;  %868 = vmatprep.subr.bf16.mxu0 %v751_v62  ;;  %1275 = vmatpush3.bf16.msra.mxu1 %v1323_v32  ;;  %v1325_v46 = vld [vmem:[%s1619_s6 + $0x18] sm:$0xff]  }
 0x341   : > { %1276 = vmatprep.subr.bf16.mxu1 %v1364_v34 }
 0x342   : > { %v842_v15 = vpack.c.bf16 %v838_v14, %v837_v13 }
 0x344   : > { %869 = vmatpush1.bf16.msra.mxu0 %v842_v15 }
 0x345   : > { %870 = vmatprep.subr.bf16.mxu0 %v750_v60  ;;  %v1061_v60 = vlaneseq }
 0x347   : > { %v1062_v63 = vshrl.u32 %v1061_v60, 7 }
 0x348   : > { %871 = vmatpush1.bf16.msra.mxu0 %v841_v55 }
 0x349   : > { %872 = vmatprep.subr.bf16.mxu0 %v749_v57  ;;  %v1063_v3 = vsub.s32 0, %v1062_v63 }
 0x34c   : > { %873 = vmatpush1.bf16.msra.mxu0 %v840_v19 }
 0x34d   : > { %1264 = vmatprep.subr.bf16.mxu0 %v1364_v34 }
 0x34f   : > { %1220 = vmatmul.mubr.msk.bf16.vlgmr.msra.gmra.mxu0 %vm849_vm12, %v1320_v37 }
 0x350   : > { %1266 = vmatprep.mubr.msk.bf16.mxu0 %vm1365_vm13, %v1364_v34  ;;  %1265 = vmatpush3.bf16.msra.mxu0 %v1501_v27  ;;  %v1324_v27 = vld [vmem:[%s1619_s6 + $0x20] sm:$0xff]  }
 0x351   : > { %1277 = vmatpush3.bf16.msra.mxu1 %v1324_v27 }
 0x352   : > { %1278 = vmatprep.subr.bf16.mxu1 %v1364_v34 }
 0x355   : > { %1279 = vmatpush3.bf16.msra.mxu1 %v1325_v46  ;;  %v1232_v46 = vld [vmem:[%s444_s17] ss:$0 sm:$0xff] }
 0x356   : > { %1280 = vmatprep.subr.bf16.mxu1 %v1364_v34 }
 0x359   : > { %1281 = vmatpush3.bf16.msra.mxu1 %v1326_v20 }
 0x35a   : > { %1282 = vmatprep.subr.bf16.mxu1 %v1364_v34 }
 0x35d   : > { %1283 = vmatpush3.bf16.msra.mxu1 %v1327_v35 }
 0x35e   : > { %1284 = vmatprep.subr.bf16.mxu1 %v1364_v34 }
 0x361   : > { %1285 = vmatpush3.bf16.msra.mxu1 %v1328_v36 }
 0x40f   : > { %v892_v21 = vpop.f32.mrf.mxu0 }
 0x411   : > { %v894_v22 = vpop.f32.mrf.mxu0 }
 0x412   : > { %v901_v23 = vadd.f32 1e-20, %v894_v22 }
 0x413   : > { %v896_v24 = vpop.f32.mrf.mxu0 }
 0x414   : > { %1343 = vrcp.f32 %v901_v23 }
 0x415   : > { %v898_v25 = vpop.f32.mrf.mxu0 }
 0x416   : > { %v902_v26 = vadd.f32 1e-20, %v898_v25 }
 0x418   : > { %1345 = vrcp.f32 %v902_v26 }
 0x421   : > { %v1344_v29 = vpop.eup %1343 }
 0x425   : > { %v1346_v31 = vpop.eup %1345 }
 0x426   : > { %v905_v33 = vpack.c.bf16 %v1346_v31, %v1344_v29 }
 0x428   : > { %1267 = vmatmul.mubr.msk.bf16.vlgmr.msra.gmra.mxu0 %vm707_vm7, %v905_v33 }
 0x4e8   : > { %v943_v38 = vpop.f32.mrf.mxu0 }
 0x4e9   : > { %v950_v41 = vmul.f32 %v943_v38, %v892_v21 }
 0x4ea   : > { %v1268_v39 = vpop.f32.mrf.mxu0 }
 0x4ec   : > { %v946_v40 = vpop.f32.mrf.mxu0 }
 0x4ed   : > { %v951_v42 = vmul.f32 %v946_v40, %v896_v24 }
 0x4ee   : > { %v1269_v43 = vpop.f32.mrf.mxu0 }
 0x4ef   : > { %v952_v44 = vpack.c.bf16 %v951_v42, %v950_v41 }
 0x4f1   : > { %1287 = vmatmul.mubr.bf16.vlgmr.msra.gmra.mxu1 %v952_v44 }
 0x5b1   : > { %v1041_v47 = vpop.f32.mrf.mxu1 }
 0x5b2   : > { %v1042_v49 = vadd.f32 %v1222_v45, %v1041_v47 }
 0x5b3   : > { %v1288_v48 = vpop.f32.mrf.mxu1 }
 0x5b4   : > { %v1048_v53 = vsel %vm519_vm1, %v1042_v49, 0.0 }
 0x5b5   : > { %v1044_v50 = vpop.f32.mrf.mxu1 }
 0x5b6   : > { %v1045_v51 = vadd.f32 %v1222_v45, %v1044_v50 }
 0x5b7   : > { %v1289_v52 = vpop.f32.mrf.mxu1 }
 0x5b8   : > { %v1049_v54 = vsel %vm519_vm1, %v1045_v51, 0.0 }
 0x5b9   : > { %v1050_v56 = vadd.f32 %v1049_v54, %v1048_v53 }
 0x5bb   : > { %v1051_v57 = vrot.slane %v1050_v56, 4 }
 0x5bd   : > { %v1052_v58 = vadd.f32 %v1051_v57, %v1050_v56 }
 0x5bf   : > { %v1053_v59 = vrot.slane %v1052_v58, 2 }
 0x5c1   : > { %v1054_v61 = vadd.f32 %v1053_v59, %v1052_v58 }
 0x5c3   : > { %v1055_v62 = vrot.slane %v1054_v61, 1 }
 0x5c5   : > { %v1056_v0 = vadd.f32 %v1055_v62, %v1054_v61 }
 0x5c7   : > { %v1058_v2 = vmul.f32 0.0625, %v1056_v0 }
 0x5c9   : > { %v1060_v5 = vmul.f32 %v1059_v1, %v1058_v2 }
 0x5cb   : > { %v1064_v6 = vrot.slane %v1060_v5, %v1063_v3 }
 0x5cd   : > { %v1065_v9 = vsub.f32 %v1042_v49, %v1064_v6  ;;  %v1066_v10 = vsub.f32 %v1045_v51, %v1064_v6 }
 0x5cf   : > { %v1067_v11 = vmul.f32 %v1065_v9, %v1065_v9  ;;  %v1068_v12 = vmul.f32 %v1066_v10, %v1066_v10  ;;  %v1086_v30 = vmul.f32 %v1231_v28, %v1065_v9  ;;  %v1087_v32 = vmul.f32 %v1231_v28, %v1066_v10 }
 0x5d1   : > { %v1069_v13 = vsel %vm519_vm1, %v1067_v11, 0.0  ;;  %v1070_v14 = vsel %vm519_vm1, %v1068_v12, 0.0 }
 0x5d2   : > { %v1071_v4 = vadd.f32 %v1070_v14, %v1069_v13 }
 0x5d4   : > { %v1072_v15 = vrot.slane %v1071_v4, 4 }
 0x5d6   : > { %v1073_v16 = vadd.f32 %v1072_v15, %v1071_v4 }
 0x5d8   : > { %v1074_v55 = vrot.slane %v1073_v16, 2 }
 0x5da   : > { %v1075_v17 = vadd.f32 %v1074_v55, %v1073_v16 }
 0x5dc   : > { %v1076_v18 = vrot.slane %v1075_v17, 1 }
 0x5de   : > { %v1077_v19 = vadd.f32 %v1076_v18, %v1075_v17 }
 0x5e0   : > { %v1078_v37 = vmul.f32 0.0625, %v1077_v19 }
 0x5e2   : > { %v1088_v34 = vadd.f32 1e-05, %v1078_v37 }
 0x5e4   : > { %1347 = vrsqrt.f32 %v1088_v34 }
 0x5f1   : > { %v1348_v27 = vpop.eup %1347 }
 0x5f2   : > { %v1090_v20 = vmul.f32 %v1348_v27, %v1086_v30  ;;  %v1091_v21 = vmul.f32 %v1348_v27, %v1087_v32 }
 0x5f4   : > { %v1099_v22 = vadd.f32 %v1232_v46, %v1090_v20  ;;  %v1100_v23 = vadd.f32 %v1232_v46, %v1091_v21 }
 0x5f6   : > { %v1101_v24 = vadd.f32 %v1099_v22, %v1470_v7  ;;  %v1102_v25 = vadd.f32 %v1100_v23, %v1472_v8 }
 0x5f8   : > { %v1105_v26 = vmul.f32 1.442695, %v1101_v24  ;;  %v1107_v29 = vmul.f32 1.442695, %v1102_v25  ;;  %vm1103_vm14 = vcmp.gt.f32.partialorder %v1101_v24, 0.0  ;;  %vm1104_vm15 = vcmp.gt.f32.partialorder %v1102_v25, 0.0 }
 0x5fa   : > { %1349 = vpow2.f32 %v1105_v26 }
 0x5fb   : > { %1351 = vpow2.f32 %v1107_v29 }
 0x607   : > { %v1350_v31 = vpop.eup %1349 }
 0x608   : > { %v1352_v33 = vpop.eup %1351  ;;  %v1233_v35 = vadd.f32 -1.0, %v1350_v31 }
 0x609   : > { %v1234_v36 = vadd.f32 -1.0, %v1352_v33 }
 0x60a   : > { %v1111_v38 = vsel %vm1103_vm14, %v1101_v24, %v1233_v35 }
 0x60b   : > { %v1112_v39 = vsel %vm1104_vm15, %v1102_v25, %v1234_v36  ;;  %1113 = vst.msk [vmem:[#allocation2] sm:$0xff] %vm519_vm1, %v1111_v38  ;;  %1115 = vst.msk [vmem:[%s1629_s14] sm:$0xff] %vm519_vm1, %v1111_v38 }
 0x60c   : > { %1114 = vst.msk [vmem:[#allocation2 + $0x8] sm:$0xff] %vm519_vm1, %v1112_v39  ;;  %1116 = vst.msk [vmem:[%s1629_s14 + $0x8] sm:$0xff] %vm519_vm1, %v1112_v39 }
 0x60d PF: > { %s1630_s15 = sld [smem:[#allocation3_spill]] }
 0x613   : > { %s21_s17 = sadd.s32 1, %s1630_s15  }
 0x614   : > { %p18_p5 = scmp.ge.s32.totalorder %s21_s17, 4  }
 0x616   :  { %20 = sbr.rel (!%p18_p5) target bundleno = 2 (0x2), region = 109 }

</bundles_post_ra>
